<compile_context>
chip_gen: v7x
topology: tpu7x:2x2x1
jax: 0.10.0
libtpu: 0.0.40
codegen_flags: <defaults>
</compile_context>

<pallas_src>
import math

import jax
import jax.numpy as jnp
from jax.experimental import pallas as pl
from jax.experimental.pallas import tpu as pltpu


def _round_up(x, m):
    return (x + m - 1) // m * m


def _cdiv(a, b):
    return (a + b - 1) // b


def _phrase_weight_kernel(eos_ref, phr_ref, wf_ref, bf_ref, out_ref):
    # eos_ref: (Bt, C)   phr_ref: (Bt, N, C)   wf_ref: (C, C)   bf_ref: (1, C)
    # out_ref: (N, Bt)   -- transposed so the batch axis is lane-dense.
    #
    # Fused projection: q2 folds Wq, Wk, bq and the 1/sqrt(C) scale (done in
    # the wrapper).  The eos_q.bk term is constant over n and cancels under
    # the softmax, so it is intentionally omitted.
    q2 = jnp.dot(eos_ref[...], wf_ref[...],
                 preferred_element_type=jnp.float32) + bf_ref[...]     # (Bt, C) f32

    # scores[b, n] = sum_c q2[b, c] * phr[b, n, c]  (L == 1): VPU broadcast
    # multiply + lane reduce over C; promotion to f32 comes from q2.
    scores = jnp.sum(q2[:, None, :] * phr_ref[...], axis=-1)           # (Bt, N) f32

    # Small XLU transpose so softmax reductions are sublane reductions and
    # the final store is lane-dense along the batch axis.
    scores_t = scores.T                                                # (N, Bt)
    m = jnp.max(scores_t, axis=0, keepdims=True)
    e = jnp.exp(scores_t - m)
    denom = jnp.sum(e, axis=0, keepdims=True)
    inv = pl.reciprocal(denom, approx=True)    # EUP slot instead of VALU divide
    out_ref[...] = (e * inv).astype(out_ref.dtype)


def phrase_weight_forward(phrase_slot, eos_emb, wq, bq, wk, bk, *, block_b=512):
    """PhraseWeight forward.

    phrase_slot: (B, N, C)   eos_emb: (B, 1, C)
    wq, wk: PyTorch-style (out, in) Linear weights; bq, bk: (C,) biases.
    Returns softmax weights of shape (B, N), f32.
    """
    B, N, C = phrase_slot.shape
    _, L, _ = eos_emb.shape
    assert L == 1, "PhraseWeight assumes a single EOS token (L == 1)."

    act_dtype = phrase_slot.dtype
    # Keep streamed activations in their incoming dtype (bf16 stays bf16 --
    # halves HBM traffic); weights follow the activation dtype, all
    # post-matmul math is f32.
    w_dtype = jnp.bfloat16 if act_dtype == jnp.bfloat16 else jnp.float32

    # Fuse Q and K linears + 1/sqrt(C) scale on the wrapper side (f32):
    #   W_fused = scale * Wq^T @ Wk   (C, C)
    #   b_fused = scale * bq  @ Wk    (1, C)
    scale = 1.0 / math.sqrt(float(C))
    wq32 = jnp.asarray(wq, jnp.float32)            # (out, in)
    wk32 = jnp.asarray(wk, jnp.float32)            # (out, in)
    bq32 = jnp.asarray(bq, jnp.float32)            # (C,)
    w_fused = ((scale * wq32.T) @ wk32).astype(w_dtype)      # (C, C)
    b_fused = ((scale * bq32) @ wk32).reshape(1, C).astype(jnp.float32)

    # Drop the size-1 L axis so the kernel sees a clean (Bt, C) tile.
    eos2 = eos_emb.reshape(B, C)

    # ---- batch tile selection -------------------------------------------
    block_b = max(128, _round_up(block_b, 128))
    if B <= 128:
        Bt = 128                                   # single lane-dense step
    else:
        # >= 2 grid steps so ("parallel",) can shard across v7x's 2 TCs.
        Bt = min(block_b, _round_up(_cdiv(B, 2), 128))

    act_bytes = jnp.dtype(act_dtype).itemsize
    w_bytes = jnp.dtype(w_dtype).itemsize

    def vmem_estimate(bt):
        stream = 2 * bt * N * C * act_bytes        # phrase_slot double buffer
        eos_b = 2 * bt * C * act_bytes             # eos double buffer
        wgt = 2 * (C * C * w_bytes + C * 4)        # fused weight + bias
        outb = 2 * N * bt * 4                      # output double buffer (f32)
        interm = bt * C * 4 + bt * N * C * 4 + 4 * N * bt * 4   # q2, product, softmax
        return stream + eos_b + wgt + outb + interm

    # Shrink Bt until the estimate fits a conservative budget (headroom for
    # v5e's 16 MiB scoped default and v7x's 64 MiB physical VMEM).
    while Bt > 128 and vmem_estimate(Bt) > (40 << 20):
        Bt = max(128, _round_up(Bt // 2, 128))
    vmem_limit = int(min(max(2 * vmem_estimate(Bt), 16 << 20), 64 << 20))

    B_pad = _round_up(B, Bt)
    if B_pad != B:
        # Padded rows see all-zero inputs -> scores 0 -> uniform softmax;
        # they are sliced away below, so nothing keys off the padded region.
        eos2 = jnp.pad(eos2, ((0, B_pad - B), (0, 0)))
        phrase_slot = jnp.pad(phrase_slot, ((0, B_pad - B), (0, 0), (0, 0)))

    out_t = pl.pallas_call(
        _phrase_weight_kernel,
        out_shape=jax.ShapeDtypeStruct((N, B_pad), jnp.float32),
        grid_spec=pl.GridSpec(
            grid=(B_pad // Bt,),
            in_specs=[
                pl.BlockSpec((Bt, C), lambda b: (b, 0)),        # eos (B, C)
                pl.BlockSpec((Bt, N, C), lambda b: (b, 0, 0)),  # phrase_slot
                pl.BlockSpec((C, C), lambda b: (0, 0)),         # W_fused
                pl.BlockSpec((1, C), lambda b: (0, 0)),         # b_fused
            ],
            out_specs=pl.BlockSpec((N, Bt), lambda b: (0, b)),  # lane-dense
        ),
        compiler_params=pltpu.CompilerParams(
            dimension_semantics=("parallel",),
            vmem_limit_bytes=vmem_limit),
    )(eos2, phrase_slot, w_fused, b_fused)

    # (N, B_pad) -> (B, N); matches the PyTorch .squeeze(1).
    return out_t[:, :B].T


def _reference(phrase_slot, eos_emb, wq, bq, wk, bk):
    c = phrase_slot.shape[2]
    eos_q = jnp.einsum('blc,oc->blo', eos_emb, wq) + bq
    phrase_k = jnp.einsum('bnc,oc->bno', phrase_slot, wk) + bk
    dot = jnp.einsum('blc,bnc->bln', eos_q, phrase_k) / math.sqrt(c)
    return jax.nn.softmax(dot, axis=2).squeeze(1)


if __name__ == "__main__":
    key = jax.random.PRNGKey(0)
    k1, k2, k3, k4, k5, k6 = jax.random.split(key, 6)

    B, L, N, C = 2, 1, 8, 32   # batch, eos length (1), num phrases, hidden dim

    phrase_slot = jax.random.normal(k1, (B, N, C), dtype=jnp.float32)
    eos_emb = jax.random.normal(k2, (B, L, C), dtype=jnp.float32)

    # Deterministic parameter init mimicking nn.Linear defaults (uniform).
    bound = 1.0 / math.sqrt(C)
    wq = jax.random.uniform(k3, (C, C), jnp.float32, -bound, bound)
    bq = jax.random.uniform(k4, (C,), jnp.float32, -bound, bound)
    wk = jax.random.uniform(k5, (C, C), jnp.float32, -bound, bound)
    bk = jax.random.uniform(k6, (C,), jnp.float32, -bound, bound)

    out = phrase_weight_forward(phrase_slot, eos_emb, wq, bq, wk, bk)
    out = jax.block_until_ready(out)

    ref = _reference(phrase_slot, eos_emb, wq, bq, wk, bk)
    assert out.shape == (B, N), out.shape
    # Tolerance allows for the EUP approximate reciprocal in the softmax
    # normalization and the algebraically-fused (shift-invariant) scores.
    assert jnp.allclose(out, ref, atol=2e-3, rtol=2e-3), (
        float(jnp.max(jnp.abs(out - ref))))

    print("KERNEL_OK")
</pallas_src>

<mosaic_0001>
module attributes {stable_mosaic.version = 11 : i64} {
  func.func @_phrase_weight_kernel(%arg0: i32, %arg1: memref<128x32xf32, #tpu.memory_space<vmem>>, %arg2: memref<128x8x32xf32, #tpu.memory_space<vmem>>, %arg3: memref<32x32xf32, #tpu.memory_space<vmem>>, %arg4: memref<1x32xf32, #tpu.memory_space<vmem>>, %arg5: memref<8x128xf32, #tpu.memory_space<vmem>>) attributes {dimension_semantics = [#tpu.dimension_semantics<parallel>], iteration_bounds = array<i64: 1>, scalar_prefetch = 0 : i64, scratch_operands = 0 : i64, tpu.core_type = #tpu.core_type<tc>, window_params = [{transform_indices = @transform_0, window_bounds = array<i64: 128, 32>}, {transform_indices = @transform_1, window_bounds = array<i64: 128, 8, 32>}, {pipeline_mode = #tpu.pipeline_mode<synchronous>, transform_indices = @transform_2, window_bounds = array<i64: 32, 32>}, {pipeline_mode = #tpu.pipeline_mode<synchronous>, transform_indices = @transform_3, window_bounds = array<i64: 1, 32>}, {transform_indices = @transform_4, window_bounds = array<i64: 8, 128>}]} {
    %c0 = arith.constant 0 : index
    %c0_0 = arith.constant 0 : index
    %0 = vector.load %arg1[%c0, %c0_0] : memref<128x32xf32, #tpu.memory_space<vmem>>, vector<128x32xf32>
    %c0_1 = arith.constant 0 : index
    %c0_2 = arith.constant 0 : index
    %1 = vector.load %arg3[%c0_1, %c0_2] : memref<32x32xf32, #tpu.memory_space<vmem>>, vector<32x32xf32>
    %cst = arith.constant dense<0.000000e+00> : vector<128x32xf32>
    %2 = tpu.matmul %0, %1, %cst {dimension_numbers = #tpu.dot_dimension_numbers<[1], [0], [0], [1], [0, 0, 1, 1], [], []>} : vector<128x32xf32>, vector<32x32xf32>, vector<128x32xf32> -> vector<128x32xf32>
    %c0_3 = arith.constant 0 : index
    %c0_4 = arith.constant 0 : index
    %3 = vector.load %arg4[%c0_3, %c0_4] : memref<1x32xf32, #tpu.memory_space<vmem>>, vector<1x32xf32>
    %4 = vector.broadcast %3 : vector<1x32xf32> to vector<128x32xf32>
    %5 = arith.addf %2, %4 : vector<128x32xf32>
    %6 = vector.shape_cast %5 : vector<128x32xf32> to vector<128x1x32xf32>
    %c0_5 = arith.constant 0 : index
    %c0_6 = arith.constant 0 : index
    %c0_7 = arith.constant 0 : index
    %7 = vector.load %arg2[%c0_5, %c0_6, %c0_7] : memref<128x8x32xf32, #tpu.memory_space<vmem>>, vector<128x8x32xf32>
    %8 = vector.broadcast %6 : vector<128x1x32xf32> to vector<128x8x32xf32>
    %9 = arith.mulf %8, %7 : vector<128x8x32xf32>
    %cst_8 = arith.constant dense<0.000000e+00> : vector<128x8xf32>
    %10 = vector.multi_reduction <add>, %9, %cst_8 [2] : vector<128x8x32xf32> to vector<128x8xf32>
    %11 = tpu.transpose %10, [1, 0] : vector<128x8xf32> -> vector<8x128xf32>
    %cst_9 = arith.constant dense<0xFF800000> : vector<128xf32>
    %12 = vector.multi_reduction <maximumf>, %11, %cst_9 [0] : vector<8x128xf32> to vector<128xf32>
    %13 = vector.shape_cast %12 : vector<128xf32> to vector<1x128xf32>
    %14 = vector.broadcast %13 : vector<1x128xf32> to vector<8x128xf32>
    %15 = arith.subf %11, %14 : vector<8x128xf32>
    %16 = math.exp %15 : vector<8x128xf32>
    %cst_10 = arith.constant dense<0.000000e+00> : vector<128xf32>
    %17 = vector.multi_reduction <add>, %16, %cst_10 [0] : vector<8x128xf32> to vector<128xf32>
    %18 = vector.shape_cast %17 : vector<128xf32> to vector<1x128xf32>
    %19 = tpu.reciprocal %18 {approx = true} : vector<1x128xf32> -> vector<1x128xf32>
    %20 = vector.broadcast %19 : vector<1x128xf32> to vector<8x128xf32>
    %21 = arith.mulf %16, %20 : vector<8x128xf32>
    %c0_11 = arith.constant 0 : index
    %c0_12 = arith.constant 0 : index
    %22 = vector.load %arg5[%c0_11, %c0_12] : memref<8x128xf32, #tpu.memory_space<vmem>>, vector<8x128xf32>
    tpu.vector_store %arg5[%c0_11, %c0_12], %21 {strides = array<i32>} : memref<8x128xf32, #tpu.memory_space<vmem>>, vector<8x128xf32>,
    return
  }
  func.func @transform_0(%arg0: i32) -> (i32, i32) {
    %c0_i32 = arith.constant 0 : i32
    %c0_i32_0 = arith.constant 0 : i32
    return %arg0, %c0_i32 : i32, i32
  }
  func.func @transform_1(%arg0: i32) -> (i32, i32, i32) {
    %c0_i32 = arith.constant 0 : i32
    %c0_i32_0 = arith.constant 0 : i32
    %c0_i32_1 = arith.constant 0 : i32
    return %arg0, %c0_i32, %c0_i32_0 : i32, i32, i32
  }
  func.func @transform_2(%arg0: i32) -> (i32, i32) {
    %c0_i32 = arith.constant 0 : i32
    %c0_i32_0 = arith.constant 0 : i32
    %c0_i32_1 = arith.constant 0 : i32
    return %c0_i32, %c0_i32_0 : i32, i32
  }
  func.func @transform_3(%arg0: i32) -> (i32, i32) {
    %c0_i32 = arith.constant 0 : i32
    %c0_i32_0 = arith.constant 0 : i32
    %c0_i32_1 = arith.constant 0 : i32
    return %c0_i32, %c0_i32_0 : i32, i32
  }
  func.func @transform_4(%arg0: i32) -> (i32, i32) {
    %c0_i32 = arith.constant 0 : i32
    %c0_i32_0 = arith.constant 0 : i32
    return %c0_i32, %arg0 : i32, i32
  }
}

</mosaic_0001>

<bundles_post_ra>
// kernel: tpu_custom_call.1
= control target key start
LH: loop header
LB: loop body
LE: loop exit
PB: predicated region body
PF: predicated region fallthrough
CT: control target
= control target key end

     0   :  { %vm45_vm0 = vcmask 261120   ;;  %s4996_s0 = inlined_call_operand.vmem [shape: f32[128,32], index: 0, kind: input, shape index: {}]   ;;  %s4997_s1 = inlined_call_operand.vmem [shape: f32[128,8,32], index: 1, kind: input, shape index: {}]   ;;  %s4998_s2 = inlined_call_operand.vmem [shape: f32[32,32], index: 2, kind: input, shape index: {}]   ;;  %s4999_s3 = inlined_call_operand.vmem [shape: f32[1,32], index: 3, kind: input, shape index: {}]   ;;  %s5000_s4 = inlined_call_operand.hbm [shape: f32[8,128], index: 4, kind: output, shape index: {}]  }
   0x1   :  { %v34_v0 = vld [vmem:[%s4998_s2] sm:$0xff]  ;;  %v35_v1 = vld [vmem:[%s4998_s2 + $0x8] sm:$0xff]  ;;  %v36_v2 = vld [vmem:[%s4998_s2 + $0x10] sm:$0xff] }
   0x2   :  { %v3229_v3 = vpack.c.bf16 %v35_v1, %v34_v0  ;;  %v37_v4 = vld [vmem:[%s4998_s2 + $0x18] sm:$0xff]  ;;  %v18_v5 = vld [vmem:[%s4996_s0] sm:$0xff] }
   0x3   :  { %v26_v6 = vld [vmem:[%s4996_s0 + $0x40] sm:$0xff]  ;;  %v3233_v7 = vpack.c.bf16 %v37_v4, %v36_v2  ;;  %3205 = vmatprep.mubr.msk.f32.mxu0 %vm45_vm0, %v18_v5 }
   0x4   :  { %3217 = vmatprep.mubr.msk.f32.mxu1 %vm45_vm0, %v26_v6  ;;  %3230 = vmatprep.subr.bf16.mxu0 %v3229_v3 }
   0x5   :  { %3237 = vmatprep.subr.bf16.mxu1 %v3229_v3  ;;  %3232 = vmatpush3.bf16.msra.mxu0 %v3229_v3 }
   0x6   :  { %3239 = vmatpush3.bf16.msra.mxu1 %v3229_v3  ;;  %3234 = vmatprep.subr.bf16.mxu0 %v3233_v7 }
   0x7   :  { %3238 = vmatprep.subr.bf16.mxu1 %v3233_v7 }
   0x8   :  { %9 = vsyncpa [#allocation3], 0  ;;  %v19_v8 = vld [vmem:[%s4996_s0 + $0x8] sm:$0xff]  ;;  %v20_v10 = vld [vmem:[%s4996_s0 + $0x10] sm:$0xff]  ;;  %v259_v22 = vlaneseq  ;;  %v3272_v26 = vmov 1966171168  }
   0x9   :  { %3236 = vmatpush3.bf16.msra.mxu0 %v3233_v7  ;;  %v27_v9 = vld [vmem:[%s4996_s0 + $0x48] sm:$0xff]  ;;  %v28_v11 = vld [vmem:[%s4996_s0 + $0x50] sm:$0xff]  ;;  %v21_v12 = vld [vmem:[%s4996_s0 + $0x18] sm:$0xff]  ;;  %v257_v27 = vunpack.c.l.s4 %v3272_v26  ;;  %vm2961_vm1 = vcmask 1041409   ;;  %vm2963_vm2 = vcmask 1042434   ;;  %vm2965_vm3 = vcmask 1043459  }
   0xa   :  { %3240 = vmatpush3.bf16.msra.mxu1 %v3233_v7  ;;  %v29_v13 = vld [vmem:[%s4996_s0 + $0x58] sm:$0xff]  ;;  %v22_v14 = vld [vmem:[%s4996_s0 + $0x20] sm:$0xff]  ;;  %v23_v16 = vld [vmem:[%s4996_s0 + $0x28] sm:$0xff]  ;;  %v260_v23 = vshrl.u32 %v259_v22, 7  ;;  %v2448_v24 = vand.u32 127, %v259_v22  ;;  %vm2967_vm4 = vcmask 1044484  }
   0xb   :  { %v30_v15 = vld [vmem:[%s4996_s0 + $0x60] sm:$0xff]  ;;  %v31_v17 = vld [vmem:[%s4996_s0 + $0x68] sm:$0xff]  ;;  %v24_v18 = vld [vmem:[%s4996_s0 + $0x30] sm:$0xff]  ;;  %v258_v28 = vunpack.c.0.s8 %v257_v27  ;;  %vm2969_vm5 = vcmask 1045509   ;;  %vm2971_vm6 = vcmask 1046534   ;;  %vm2973_vm7 = vcmask 1047559  }
   0xc   :  { %3206 = vmatmul.mubr.msk.f32.vlgmr.msra.gmra.mrb[0].mxu0 %vm45_vm0, %v19_v8  ;;  %v32_v19 = vld [vmem:[%s4996_s0 + $0x70] sm:$0xff]  ;;  %v25_v20 = vld [vmem:[%s4996_s0 + $0x38] sm:$0xff]  ;;  %v3375_v25 = vsub.s32 %v2448_v24, %v260_v23  ;;  %v3380_v29 = vld [vmem:[%s4999_s3] ss:$0 sm:$0xff]  ;;  %v3402_v44 = vsub.s32 0, %v260_v23 }
   0xd   :  { %3218 = vmatmul.mubr.msk.f32.vlgmr.msra.gmra.mrb[0].mxu1 %vm45_vm0, %v27_v9  ;;  %3208 = vmatprep.mubr.msk.f32.mxu0 %vm45_vm0, %v20_v10  ;;  %v33_v21 = vld [vmem:[%s4996_s0 + $0x78] sm:$0xff]  ;;  %v3382_v30 = vsub.s32 %v258_v28, %v260_v23  ;;  %v1111_v54 = vld [vmem:[%s4997_s1 + $0x240] sm:$0xff] }
   0xe   :  { %3220 = vmatprep.mubr.msk.f32.mxu1 %vm45_vm0, %v28_v11  ;;  %v1047_v58 = vld [vmem:[%s4997_s1 + $0x40] sm:$0xff] }
   0xf   :  { %v1103_v63 = vld [vmem:[%s4997_s1 + $0x200] sm:$0xff] }
  0x10   :  { %3209 = vmatmul.mubr.msk.f32.gmra.mrb[2].mxu0 %vm45_vm0, %v21_v12  ;;  %v1039_v6 = vld [vmem:[%s4997_s1] sm:$0xff] }
  0x11   :  { %3221 = vmatmul.mubr.msk.f32.gmra.mrb[2].mxu1 %vm45_vm0, %v29_v13  ;;  %3211 = vmatprep.mubr.msk.f32.mxu0 %vm45_vm0, %v22_v14  ;;  %v1115_v28 = vld [vmem:[%s4997_s1 + $0x260] sm:$0xff] }
  0x12   :  { %3223 = vmatprep.mubr.msk.f32.mxu1 %vm45_vm0, %v30_v15 }
  0x14   :  { %3212 = vmatmul.mubr.msk.f32.gmra.mrb[4].mxu0 %vm45_vm0, %v23_v16  ;;  %v1048_v16 = vld [vmem:[%s4997_s1 + $0x48] sm:$0xff] }
  0x15   :  { %3224 = vmatmul.mubr.msk.f32.gmra.mrb[4].mxu1 %vm45_vm0, %v31_v17  ;;  %3214 = vmatprep.mubr.msk.f32.mxu0 %vm45_vm0, %v24_v18 }
  0x16   :  { %3226 = vmatprep.mubr.msk.f32.mxu1 %vm45_vm0, %v32_v19 }
  0x18   :  { %3215 = vmatmul.mubr.msk.f32.gmra.mrb[6].mxu0 %vm45_vm0, %v25_v20  ;;  %v1049_v20 = vld [vmem:[%s4997_s1 + $0x50] sm:$0xff] }
  0x19   :  { %3227 = vmatmul.mubr.msk.f32.gmra.mrb[6].mxu1 %vm45_vm0, %v33_v21 }
  0xdf   :  { %v3207_v31 = vpop.f32.mrb[0].mxu0 }
  0xe0   :  { %v3219_v32 = vpop.f32.mrb[0].mxu1  ;;  %v166_v33 = vadd.f32 %v3207_v31, %v3380_v29  ;;  %v160_v35 = vpop.f32.mrb[1].mxu0 }
  0xe1   :  { %v206_v34 = vadd.f32 %v3219_v32, %v3380_v29  ;;  %v200_v36 = vpop.f32.mrb[1].mxu1  ;;  %v3387_v37 = vadd.f32 %v3380_v29, %v160_v35 }
  0xe2   :  { %v3390_v38 = vadd.f32 %v3380_v29, %v200_v36  ;;  %v311_v39 = vrot.slane %v166_v33, %v3382_v30  ;;  %v304_v47 = vcombine.high %v166_v33, %v166_v33  ;;  %v1051_v33 = vld [vmem:[%s4997_s1 + $0x60] sm:$0xff] }
  0xe3   :  { %v703_v40 = vrot.slane %v206_v34, %v3382_v30  ;;  %v696_v41 = vcombine.high %v206_v34, %v206_v34  ;;  %v3396_v42 = vrot.slane %v3387_v37, %v3382_v30  ;;  %v3404_v45 = vpop.f32.mrb[2].mxu0  ;;  %v255_v34 = vcombine.high %v3387_v37, %v3387_v37  ;;  %v1041_v37 = vld [vmem:[%s4997_s1 + $0x10] sm:$0xff] }
  0xe4   :  { %v3400_v43 = vrot.slane %v3390_v38, %v3382_v30  ;;  %v3406_v46 = vpop.f32.mrb[2].mxu1  ;;  %v319_v48 = vcombine.high %v311_v39, %v311_v39  ;;  %v327_v49 = vrot.slane %v311_v39, %v3382_v30  ;;  %v3409_v50 = vpop.f32.mrb[3].mxu0  ;;  %v3436_v61 = vrot.slane %v304_v47, %v3382_v30 }
  0xe5   :  { %v3411_v51 = vpop.f32.mrb[3].mxu1  ;;  %v3414_v52 = vrot.slane %v703_v40, %v3382_v30  ;;  %v278_v53 = vrot.slane %v3396_v42, %v3382_v30  ;;  %v3422_v55 = vrot.slane %v696_v41, %v3382_v30  ;;  %v711_v8 = vcombine.high %v703_v40, %v703_v40 }
  0xe6   :  { %v670_v56 = vrot.slane %v3400_v43, %v3382_v30  ;;  %v1202_v62 = vrot.slane %v327_v49, %v3402_v44  ;;  %v3444_v1 = vrot.slane %v319_v48, %v3382_v30  ;;  %v349_v7 = vcombine.high %v327_v49, %v327_v49 }
  0xe7   :  { %v1458_v57 = vrot.slane %v3414_v52, %v3402_v44  ;;  %v3431_v59 = vpop.f32.mrb[4].mxu0  ;;  %v1170_v0 = vrot.slane %v278_v53, %v3402_v44  ;;  %v3459_v13 = vrot.slane %v3422_v55, %v3382_v30  ;;  %v3468_v18 = vrot.slane %v3436_v61, %v3382_v30 }
  0xe8   :  { %v3433_v60 = vpop.f32.mrb[4].mxu1  ;;  %v3446_v2 = vpop.f32.mrb[5].mxu0  ;;  %v1426_v5 = vrot.slane %v670_v56, %v3402_v44  ;;  %v1815_v9 = vmul.f32 %v1202_v62, %v1047_v58  ;;  %v1206_v12 = vrot.slane %v3444_v1, %v3402_v44  ;;  %v1210_v17 = vrot.slane %v349_v7, %v3402_v44 }
  0xe9   :  { %v3448_v3 = vpop.f32.mrb[5].mxu1  ;;  %v1879_v4 = vmul.f32 %v1458_v57, %v1111_v54  ;;  %v1807_v15 = vmul.f32 %v1170_v0, %v1039_v6  ;;  %v647_v21 = vcombine.high %v3390_v38, %v3390_v38  ;;  %v1474_v23 = vrot.slane %v3459_v13, %v3402_v44  ;;  %v1113_v6 = vld [vmem:[%s4997_s1 + $0x250] sm:$0xff] }
  0xea   :  { %v1871_v11 = vmul.f32 %v1426_v5, %v1103_v63  ;;  %v1959_v14 = vsel %vm45_vm0, %v1815_v9, 0.0  ;;  %v1816_v22 = vmul.f32 %v1206_v12, %v1048_v16  ;;  %v300_v24 = vcombine.high %v278_v53, %v278_v53  ;;  %v1112_v53 = vld [vmem:[%s4997_s1 + $0x248] sm:$0xff] }
  0xeb   :  { %v2151_v10 = vsel %vm45_vm0, %v1879_v4, 0.0  ;;  %1960 = vadd.xlane.f32.xlu0 %v1959_v14  ;;  %v1935_v26 = vsel %vm45_vm0, %v1807_v15, 0.0  ;;  %v1817_v27 = vmul.f32 %v1210_v17, %v1049_v20  ;;  %v1218_v31 = vrot.slane %v3468_v18, %v3402_v44  ;;  %v1105_v4 = vld [vmem:[%s4997_s1 + $0x210] sm:$0xff] }
  0xec   :  { %2152 = vadd.xlane.f32.xlu1 %v2151_v10  ;;  %v2127_v19 = vsel %vm45_vm0, %v1871_v11, 0.0  ;;  %v3485_v32 = vrot.slane %v711_v8, %v3382_v30  ;;  %v270_v35 = vcombine.high %v3396_v42, %v3396_v42  ;;  %v3495_v36 = vrot.slane %v647_v21, %v3382_v30 }
  0xed   :  { %v1962_v38 = vsel %vm45_vm0, %v1816_v22, 0.0  ;;  %v1883_v39 = vmul.f32 %v1474_v23, %v1115_v28  ;;  %v1178_v40 = vrot.slane %v300_v24, %v3402_v44  ;;  %v692_v41 = vcombine.high %v670_v56, %v670_v56  ;;  %v1043_v28 = vld [vmem:[%s4997_s1 + $0x20] sm:$0xff] }
  0xee   :  { %v1965_v47 = vsel %vm45_vm0, %v1817_v27, 0.0  ;;  %v1819_v48 = vmul.f32 %v1218_v31, %v1051_v33  ;;  %v1462_v49 = vrot.slane %v3485_v32, %v3402_v44  ;;  %v741_v42 = vcombine.high %v3414_v52, %v3414_v52 }
  0xef   :  { %1936 = vadd.xlane.f32.xlu0 %v1935_v26  ;;  %v3511_v54 = vrot.slane %v255_v34, %v3382_v30  ;;  %v2163_v56 = vsel %vm45_vm0, %v1883_v39, 0.0  ;;  %v1809_v57 = vmul.f32 %v1178_v40, %v1041_v37  ;;  %v1434_v58 = vrot.slane %v692_v41, %v3402_v44  ;;  %v1050_v26 = vld [vmem:[%s4997_s1 + $0x58] sm:$0xff]  ;;  %v1052_v41 = vld [vmem:[%s4997_s1 + $0x68] sm:$0xff] }
  0xf0   :  { %2128 = vadd.xlane.f32.xlu1 %v2127_v19  ;;  %v3517_v62 = vrot.slane %v3495_v36, %v3382_v30  ;;  %v1971_v52 = vsel %vm45_vm0, %v1819_v48, 0.0  ;;  %v1880_v63 = vmul.f32 %v1462_v49, %v1112_v53  ;;  %v1466_v0 = vrot.slane %v741_v42, %v3402_v44  ;;  %v1104_v49 = vld [vmem:[%s4997_s1 + $0x208] sm:$0xff] }
  0xf1   :  { %v3525_v5 = vrot.slane %v270_v35, %v3382_v30  ;;  %v320_v7 = vcombine.high %v3436_v61, %v3436_v61  ;;  %v662_v8 = vcombine.high %v3400_v43, %v3400_v43  ;;  %v1941_v9 = vsel %vm45_vm0, %v1809_v57, 0.0  ;;  %v1107_v61 = vld [vmem:[%s4997_s1 + $0x220] sm:$0xff] }
  0xf2   :  { %v1873_v10 = vmul.f32 %v1434_v58, %v1105_v4  ;;  %v1442_v11 = vrot.slane %v3517_v62, %v3402_v44  ;;  %v351_v12 = vcombine.high %v3444_v1, %v3444_v1  ;;  %v2154_v14 = vsel %vm45_vm0, %v1880_v63, 0.0  ;;  %v1040_v1 = vld [vmem:[%s4997_s1 + $0x8] sm:$0xff] }
  0xf3   :  { %1966 = vadd.xlane.f32.xlu0 %v1965_v47  ;;  %v1881_v15 = vmul.f32 %v1466_v0, %v1113_v6  ;;  %v1174_v43 = vrot.slane %v3525_v5, %v3402_v44  ;;  %v3547_v16 = vrot.slane %v3511_v54, %v3382_v30  ;;  %v3554_v17 = vadd.f32 %v3404_v45, %v3380_v29  ;;  %v1053_v0 = vld [vmem:[%s4997_s1 + $0x70] sm:$0xff] }
  0xf4   :  { %1963 = vadd.xlane.f32.xlu1 %v1962_v38  ;;  %v2133_v19 = vsel %vm45_vm0, %v1873_v10, 0.0  ;;  %v1875_v20 = vmul.f32 %v1442_v11, %v1107_v61  ;;  %v1214_v21 = vrot.slane %v351_v12, %v3402_v44  ;;  %v3559_v22 = vrot.slane %v320_v7, %v3382_v30  ;;  %v1042_v12 = vld [vmem:[%s4997_s1 + $0x18] sm:$0xff] }
  0xf5   :  { %v2157_v23 = vsel %vm45_vm0, %v1881_v15, 0.0  ;;  %v1808_v24 = vmul.f32 %v1174_v43, %v1040_v1  ;;  %v1186_v45 = vrot.slane %v3547_v16, %v3402_v44  ;;  %v3568_v27 = vrot.slane %v662_v8, %v3382_v30  ;;  %v1063_v8 = vld [vmem:[%s4997_s1 + $0xc0] sm:$0xff]  ;;  %v3636_v15 = vpop.f32.mrb[6].mxu0 }
  0xf6   :  { %v3575_v31 = vrot.slane %v3554_v17, %v3382_v30  ;;  %v2139_v33 = vsel %vm45_vm0, %v1875_v20, 0.0  ;;  %v1818_v34 = vmul.f32 %v1214_v21, %v1050_v26  ;;  %v1222_v35 = vrot.slane %v3559_v22, %v3402_v44 }
  0xf7   :  { %1972 = vadd.xlane.f32.xlu0 %v1971_v52  ;;  %v743_v38 = vcombine.high %v3485_v32, %v3485_v32  ;;  %v1938_v39 = vsel %vm45_vm0, %v1808_v24, 0.0  ;;  %v1811_v40 = vmul.f32 %v1186_v45, %v1043_v28  ;;  %v1430_v47 = vrot.slane %v3568_v27, %v3402_v44  ;;  %v1044_v28 = vld [vmem:[%s4997_s1 + $0x28] sm:$0xff] }
  0xf8   :  { %2164 = vadd.xlane.f32.xlu1 %v2163_v56  ;;  %v350_v48 = vcombine.high %v3468_v18, %v3468_v18  ;;  %v271_v32 = vcombine.high %v3511_v54, %v3511_v54  ;;  %v3597_v37 = vrot.slane %v3575_v31, %v3382_v30  ;;  %v3601_v42 = vadd.f32 %v3406_v46, %v3380_v29  ;;  %v1114_v46 = vld [vmem:[%s4997_s1 + $0x258] sm:$0xff] }
  0xf9   :  { %v1968_v53 = vsel %vm45_vm0, %v1818_v34, 0.0  ;;  %v1820_v56 = vmul.f32 %v1222_v35, %v1052_v41  ;;  %v1470_v18 = vrot.slane %v743_v38, %v3402_v44  ;;  %v302_v57 = vcombine.high %v3525_v5, %v3525_v5 }
  0xfa   :  { %v712_v58 = vcombine.high %v3422_v55, %v3422_v55  ;;  %v1947_v54 = vsel %vm45_vm0, %v1811_v40, 0.0  ;;  %v1872_v52 = vmul.f32 %v1430_v47, %v1104_v49  ;;  %v1226_v63 = vrot.slane %v350_v48, %v3402_v44  ;;  %v1054_v49 = vld [vmem:[%s4997_s1 + $0x78] sm:$0xff] }
  0xfb   :  { %2155 = vadd.xlane.f32.xlu0 %v2154_v14  ;;  %v801_v4 = vrot.slane %v3601_v42, %v3382_v30  ;;  %v1266_v55 = vrot.slane %v3597_v37, %v3402_v44  ;;  %v1974_v5 = vsel %vm45_vm0, %v1820_v56, 0.0  ;;  %v1882_v6 = vmul.f32 %v1470_v18, %v1114_v46 }
  0xfc   :  { %1942 = vadd.xlane.f32.xlu1 %v1941_v9  ;;  %v1182_v7 = vrot.slane %v302_v57, %v3402_v44  ;;  %v3627_v9 = vrot.slane %v271_v32, %v3382_v30  ;;  %v2130_v10 = vsel %vm45_vm0, %v1872_v52, 0.0  ;;  %v1821_v11 = vmul.f32 %v1226_v63, %v1053_v0  ;;  %v1064_v63 = vld [vmem:[%s4997_s1 + $0xc8] sm:$0xff] }
  0xfd   :  { %v3634_v14 = vrot.slane %v712_v58, %v3382_v30  ;;  %v417_v61 = vcombine.high %v3575_v31, %v3575_v31  ;;  %v3641_v43 = vrot.slane %v801_v4, %v3382_v30  ;;  %v1831_v1 = vmul.f32 %v1266_v55, %v1063_v8  ;;  %v1116_v31 = vld [vmem:[%s4997_s1 + $0x268] sm:$0xff] }
  0xfe   :  { %v2160_v20 = vsel %vm45_vm0, %v1882_v6, 0.0  ;;  %v1810_v21 = vmul.f32 %v1182_v7, %v1042_v12  ;;  %v352_v24 = vcombine.high %v3559_v22, %v3559_v22  ;;  %v1977_v26 = vsel %vm45_vm0, %v1821_v11, 0.0 }
  0xff   :  { %2158 = vadd.xlane.f32.xlu0 %v2157_v23  ;;  %v1190_v23 = vrot.slane %v3627_v9, %v3402_v44  ;;  %v1478_v45 = vrot.slane %v3634_v14, %v3402_v44  ;;  %v2007_v34 = vsel %vm45_vm0, %v1831_v1, 0.0  ;;  %v1522_v22 = vrot.slane %v3641_v43, %v3402_v44  ;;  %v1045_v1 = vld [vmem:[%s4997_s1 + $0x30] sm:$0xff] }
 0x100   :  { %2134 = vadd.xlane.f32.xlu1 %v2133_v19  ;;  %v3643_v19 = vpop.f32.mrb[7].mxu0  ;;  %v1944_v35 = vsel %vm45_vm0, %v1810_v21, 0.0  ;;  %v1230_v40 = vrot.slane %v352_v24, %v3402_v44  ;;  %v3668_v41 = vrot.slane %v417_v61, %v3382_v30  ;;  %v3672_v47 = vadd.f32 %v3380_v29, %v3409_v50  ;;  %v1128_v61 = vld [vmem:[%s4997_s1 + $0x2c8] sm:$0xff] }
 0x101   :  { %v1812_v38 = vmul.f32 %v1190_v23, %v1044_v28  ;;  %v1884_v48 = vmul.f32 %v1478_v45, %v1116_v31  ;;  %v742_v32 = vcombine.high %v3459_v13, %v3459_v13  ;;  %v794_v56 = vcombine.high %v3601_v42, %v3601_v42 }
 0x102   :  { %v1822_v58 = vmul.f32 %v1230_v40, %v1054_v49  ;;  %v360_v13 = vrot.slane %v3672_v47, %v3382_v30  ;;  %v301_v0 = vcombine.high %v3547_v16, %v3547_v16  ;;  %v303_v40 = vcombine.high %v3627_v9, %v3627_v9 }
 0x103   :  { %1939 = vadd.xlane.f32.xlu0 %v1938_v39  ;;  %v1127_v39 = vld [vmem:[%s4997_s1 + $0x2c0] sm:$0xff]  ;;  %v1950_v50 = vsel %vm45_vm0, %v1812_v38, 0.0  ;;  %v2166_v46 = vsel %vm45_vm0, %v1884_v48, 0.0  ;;  %v1482_v42 = vrot.slane %v742_v32, %v3402_v44  ;;  %v3704_v55 = vrot.slane %v794_v56, %v3382_v30 }
 0x104   :  { %2140 = vadd.xlane.f32.xlu1 %v2139_v33  ;;  %v809_v33 = vcombine.high %v801_v4, %v801_v4  ;;  %v1895_v18 = vmul.f32 %v1522_v22, %v1127_v39  ;;  %v1117_v4 = vld [vmem:[%s4997_s1 + $0x270] sm:$0xff]  ;;  %v1980_v6 = vsel %vm45_vm0, %v1822_v58, 0.0  ;;  %v3713_v16 = vrot.slane %v360_v13, %v3382_v30  ;;  %v1131_v32 = vld [vmem:[%s4997_s1 + $0x2e0] sm:$0xff] }
 0x105   :  { %v1885_v11 = vmul.f32 %v1482_v42, %v1117_v4  ;;  %v1194_v12 = vrot.slane %v301_v0, %v3402_v44  ;;  %v1046_v4 = vld [vmem:[%s4997_s1 + $0x38] sm:$0xff] }
 0x106   :  { %v3689_v52 = vrot.slane %v809_v33, %v3382_v30  ;;  %v1234_v31 = vrot.slane %v3713_v16, %v3402_v44  ;;  %v1055_v33 = vld [vmem:[%s4997_s1 + $0x80] sm:$0xff] }
 0x107   :  { %1948 = vadd.xlane.f32.xlu0 %v1947_v54  ;;  %v1270_v54 = vrot.slane %v3668_v41, %v3402_v44  ;;  %v2169_v45 = vsel %vm45_vm0, %v1885_v11, 0.0  ;;  %v1813_v28 = vmul.f32 %v1194_v12, %v1045_v1 }
 0x108   :  { %1969 = vadd.xlane.f32.xlu1 %v1968_v53  ;;  %v3679_v53 = vpop.f32.mrb[6].mxu1  ;;  %v1526_v8 = vrot.slane %v3689_v52, %v3402_v44 }
 0x109   :  { %v3683_v57 = vpop.f32.mrb[7].mxu1  ;;  %v1832_v7 = vmul.f32 %v1270_v54, %v1064_v63  ;;  %v1953_v48 = vsel %vm45_vm0, %v1813_v28, 0.0  ;;  %v1198_v54 = vrot.slane %v303_v40, %v3402_v44 }
 0x10a   :  { %v1896_v23 = vmul.f32 %v1526_v8, %v1128_v61 }
 0x10b   :  { %2131 = vadd.xlane.f32.xlu0 %v2130_v10  ;;  %v744_v10 = vcombine.high %v3634_v14, %v3634_v14  ;;  %v211_v14 = vadd.f32 %v3380_v29, %v3411_v51  ;;  %v2010_v21 = vsel %vm45_vm0, %v1832_v7, 0.0  ;;  %v1118_v51 = vld [vmem:[%s4997_s1 + $0x278] sm:$0xff] }
 0x10c   :  { %1975 = vadd.xlane.f32.xlu1 %v1974_v5  ;;  %v2199_v5 = vsel %vm45_vm0, %v1895_v18, 0.0  ;;  %v1106_v18 = vld [vmem:[%s4997_s1 + $0x218] sm:$0xff] }
 0x10d   :  { %v1486_v24 = vrot.slane %v744_v10, %v3402_v44  ;;  %v752_v22 = vrot.slane %v211_v14, %v3382_v30  ;;  %v745_v7 = vcombine.high %v211_v14, %v211_v14  ;;  %v1814_v10 = vmul.f32 %v1198_v54, %v1046_v4 }
 0x10e   :  { %v693_v14 = vcombine.high %v3517_v62, %v3517_v62 }
 0x10f   :  { %1978 = vadd.xlane.f32.xlu0 %v1977_v26  ;;  %v3730_v26 = vrot.slane %v3704_v55, %v3382_v30  ;;  %v1886_v38 = vmul.f32 %v1486_v24, %v1118_v51  ;;  %v3795_v24 = vrot.slane %v745_v7, %v3382_v30  ;;  %v1067_v7 = vld [vmem:[%s4997_s1 + $0xe0] sm:$0xff] }
 0x110   :  { %2161 = vadd.xlane.f32.xlu1 %v2160_v20  ;;  %v663_v20 = vcombine.high %v3495_v36, %v3495_v36  ;;  %v694_v36 = vcombine.high %v3568_v27, %v3568_v27  ;;  %v1823_v27 = vmul.f32 %v1234_v31, %v1055_v33  ;;  %v1450_v33 = vrot.slane %v693_v14, %v3402_v44 }
 0x111   :  { %v1538_v39 = vrot.slane %v3730_v26, %v3402_v44  ;;  %v2172_v9 = vsel %vm45_vm0, %v1886_v38, 0.0  ;;  %v398_v14 = vcombine.high %v3713_v16, %v3713_v16 }
 0x112   :  { %v1438_v49 = vrot.slane %v694_v36, %v3402_v44  ;;  %v691_v56 = vrot.slane %v663_v20, %v3382_v30  ;;  %v1983_v42 = vsel %vm45_vm0, %v1823_v27, 0.0 }
 0x113   :  { %2008 = vadd.xlane.f32.xlu0 %v2007_v34  ;;  %v368_v34 = vcombine.high %v360_v13, %v360_v13  ;;  %v1899_v58 = vmul.f32 %v1538_v39, %v1131_v32  ;;  %v1110_v32 = vld [vmem:[%s4997_s1 + $0x238] sm:$0xff]  ;;  %v1242_v16 = vrot.slane %v398_v14, %v3402_v44 }
 0x114   :  { %1945 = vadd.xlane.f32.xlu1 %v1944_v35  ;;  %v2202_v35 = vsel %vm45_vm0, %v1896_v23, 0.0  ;;  %v1874_v63 = vmul.f32 %v1438_v49, %v1106_v18  ;;  %v1446_v0 = vrot.slane %v691_v56, %v3402_v44  ;;  %v695_v51 = vcombine.high %v691_v56, %v691_v56  ;;  %v1065_v18 = vld [vmem:[%s4997_s1 + $0xd0] sm:$0xff] }
 0x115   :  { %v3761_v13 = vrot.slane %v368_v34, %v3382_v30  ;;  %v2211_v8 = vsel %vm45_vm0, %v1899_v58, 0.0  ;;  %v1120_v34 = vld [vmem:[%s4997_s1 + $0x288] sm:$0xff] }
 0x116   :  { %v2136_v61 = vsel %vm45_vm0, %v1874_v63, 0.0  ;;  %v1454_v40 = vrot.slane %v695_v51, %v3402_v44  ;;  %v449_v63 = vcombine.high %v3668_v41, %v3668_v41 }
 0x117   :  { %2167 = vadd.xlane.f32.xlu0 %v2166_v46  ;;  %v3764_v46 = vrot.slane %v752_v22, %v3382_v30  ;;  %v1238_v11 = vrot.slane %v3761_v13, %v3402_v44 }
 0x118   :  { %1951 = vadd.xlane.f32.xlu1 %v1950_v50  ;;  %v760_v50 = vcombine.high %v752_v22, %v752_v22  ;;  %v447_v22 = vcombine.high %v3597_v37, %v3597_v37  ;;  %v1878_v54 = vmul.f32 %v1454_v40, %v1110_v32  ;;  %v400_v40 = vcombine.high %v3761_v13, %v3761_v13 }
 0x119   :  { %v1490_v20 = vrot.slane %v3764_v46, %v3402_v44  ;;  %v790_v32 = vcombine.high %v3764_v46, %v3764_v46 }
 0x11a   :  { %v3780_v12 = vrot.slane %v760_v50, %v3382_v30  ;;  %v1274_v37 = vrot.slane %v447_v22, %v3402_v44 }
 0x11b   :  { %2200 = vadd.xlane.f32.xlu0 %v2199_v5  ;;  %v1108_v5 = vld [vmem:[%s4997_s1 + $0x228] sm:$0xff] }
 0x11c   :  { %1981 = vadd.xlane.f32.xlu1 %v1980_v6  ;;  %v402_v6 = vcombine.high %v3554_v17, %v3554_v17  ;;  %v1876_v1 = vmul.f32 %v1446_v0, %v1108_v5  ;;  %v1056_v17 = vld [vmem:[%s4997_s1 + $0x88] sm:$0xff]  ;;  %v1494_v31 = vrot.slane %v3780_v12, %v3402_v44  ;;  %v1833_v4 = vmul.f32 %v1274_v37, %v1065_v18  ;;  %v1059_v18 = vld [vmem:[%s4997_s1 + $0xa0] sm:$0xff] }
 0x11d   :  { %v1824_v28 = vmul.f32 %v1238_v11, %v1056_v17  ;;  %v1278_v11 = vrot.slane %v449_v63, %v3402_v44  ;;  %v1066_v17 = vld [vmem:[%s4997_s1 + $0xd8] sm:$0xff]  ;;  %v1498_v63 = vrot.slane %v790_v32, %v3402_v44 }
 0x11e   :  { %v416_v23 = vrot.slane %v402_v6, %v3382_v30  ;;  %v2142_v36 = vsel %vm45_vm0, %v1876_v1, 0.0  ;;  %v1888_v39 = vmul.f32 %v1494_v31, %v1120_v34  ;;  %v839_v6 = vcombine.high %v3641_v43, %v3641_v43  ;;  %v1057_v34 = vld [vmem:[%s4997_s1 + $0x90] sm:$0xff] }
 0x11f   :  { %2170 = vadd.xlane.f32.xlu0 %v2169_v45  ;;  %v1956_v45 = vsel %vm45_vm0, %v1814_v10, 0.0  ;;  %v1986_v38 = vsel %vm45_vm0, %v1824_v28, 0.0  ;;  %v2013_v1 = vsel %vm45_vm0, %v1833_v4, 0.0  ;;  %v841_v31 = vcombine.high %v3689_v52, %v3689_v52 }
 0x120   :  { %2011 = vadd.xlane.f32.xlu1 %v2010_v21  ;;  %v1119_v21 = vld [vmem:[%s4997_s1 + $0x280] sm:$0xff]  ;;  %v3822_v56 = vrot.slane %v416_v23, %v3382_v30  ;;  %v418_v50 = vcombine.high %v416_v23, %v416_v23  ;;  %v2178_v58 = vsel %vm45_vm0, %v1888_v39, 0.0  ;;  %v1530_v43 = vrot.slane %v839_v6, %v3402_v44 }
 0x121   :  { %v1887_v62 = vmul.f32 %v1490_v20, %v1119_v21  ;;  %v1129_v21 = vld [vmem:[%s4997_s1 + $0x2d0] sm:$0xff]  ;;  %v3879_v52 = vadd.f32 %v3431_v59, %v3380_v29  ;;  %v1534_v39 = vrot.slane %v841_v31, %v3402_v44  ;;  %v1130_v59 = vld [vmem:[%s4997_s1 + $0x2d8] sm:$0xff]  ;;  %v226_v6 = vadd.f32 %v3433_v60, %v3380_v29  ;;  %v1060_v60 = vld [vmem:[%s4997_s1 + $0xa8] sm:$0xff] }
 0x122   :  { %v1282_v5 = vrot.slane %v3822_v56, %v3402_v44  ;;  %v448_v4 = vcombine.high %v3822_v56, %v3822_v56  ;;  %v792_v56 = vcombine.high %v3780_v12, %v3780_v12 }
 0x123   :  { %1954 = vadd.xlane.f32.xlu0 %v1953_v48  ;;  %v3814_v48 = vrot.slane %v3795_v24, %v3382_v30  ;;  %v2175_v27 = vsel %vm45_vm0, %v1887_v62, 0.0  ;;  %v1068_v62 = vld [vmem:[%s4997_s1 + $0xe8] sm:$0xff]  ;;  %v507_v13 = vrot.slane %v3879_v52, %v3382_v30  ;;  %v899_v12 = vrot.slane %v226_v6, %v3382_v30 }
 0x124   :  { %2203 = vadd.xlane.f32.xlu1 %v2202_v35  ;;  %v1109_v35 = vld [vmem:[%s4997_s1 + $0x230] sm:$0xff]  ;;  %v1835_v20 = vmul.f32 %v1282_v5, %v1067_v7 }
 0x125   :  { %v1877_v49 = vmul.f32 %v1450_v33, %v1109_v35  ;;  %v1121_v5 = vld [vmem:[%s4997_s1 + $0x290] sm:$0xff] }
 0x126   :  { %v2019_v51 = vsel %vm45_vm0, %v1835_v20, 0.0  ;;  %v1290_v20 = vrot.slane %v448_v4, %v3402_v44  ;;  %v840_v4 = vcombine.high %v3730_v26, %v3730_v26 }
 0x127   :  { %1984 = vadd.xlane.f32.xlu0 %v1983_v42  ;;  %v1506_v42 = vrot.slane %v3814_v48, %v3402_v44  ;;  %v2145_v0 = vsel %vm45_vm0, %v1877_v49, 0.0  ;;  %v1825_v49 = vmul.f32 %v1242_v16, %v1057_v34  ;;  %v3949_v34 = vrot.slane %v899_v12, %v3382_v30 }
 0x128   :  { %2173 = vadd.xlane.f32.xlu1 %v2172_v9  ;;  %v353_v9 = vcombine.high %v3672_v47, %v3672_v47  ;;  %v1123_v47 = vld [vmem:[%s4997_s1 + $0x2a0] sm:$0xff]  ;;  %v1546_v26 = vrot.slane %v840_v4, %v3402_v44 }
 0x129   :  { %v1891_v10 = vmul.f32 %v1506_v42, %v1123_v47  ;;  %v1989_v42 = vsel %vm45_vm0, %v1825_v49, 0.0  ;;  %v3914_v47 = vrot.slane %v507_v13, %v3382_v30  ;;  %v1070_v49 = vld [vmem:[%s4997_s1 + $0xf8] sm:$0xff] }
 0x12a   :  { %v367_v41 = vrot.slane %v353_v9, %v3382_v30  ;;  %v1898_v9 = vmul.f32 %v1534_v39, %v1130_v59  ;;  %v892_v59 = vcombine.high %v226_v6, %v226_v6 }
 0x12b   :  { %2137 = vadd.xlane.f32.xlu0 %v2136_v61  ;;  %v3849_v61 = vrot.slane %v418_v50, %v3382_v30  ;;  %v2187_v23 = vsel %vm45_vm0, %v1891_v10, 0.0  ;;  %v810_v10 = vcombine.high %v3704_v55, %v3704_v55  ;;  %v1330_v55 = vrot.slane %v3914_v47, %v3402_v44 }
 0x12c   :  { %2212 = vadd.xlane.f32.xlu1 %v2211_v8  ;;  %v2148_v8 = vsel %vm45_vm0, %v1878_v54, 0.0  ;;  %v3872_v33 = vrot.slane %v367_v41, %v3382_v30  ;;  %v369_v22 = vcombine.high %v367_v41, %v367_v41  ;;  %v2208_v7 = vsel %vm45_vm0, %v1898_v9, 0.0  ;;  %v1143_v9 = vld [vmem:[%s4997_s1 + $0x340] sm:$0xff] }
 0x12d   :  { %v1286_v28 = vrot.slane %v3849_v61, %v3402_v44  ;;  %v838_v16 = vrot.slane %v810_v10, %v3382_v30 }
 0x12e   :  { %v1250_v37 = vrot.slane %v3872_v33, %v3402_v44  ;;  %v3901_v54 = vrot.slane %v369_v22, %v3382_v30 }
 0x12f   :  { %2143 = vadd.xlane.f32.xlu0 %v2142_v36  ;;  %v1897_v36 = vmul.f32 %v1530_v43, %v1129_v21  ;;  %v1069_v43 = vld [vmem:[%s4997_s1 + $0xf0] sm:$0xff] }
 0x130   :  { %1957 = vadd.xlane.f32.xlu1 %v1956_v45  ;;  %v1834_v45 = vmul.f32 %v1278_v11, %v1066_v17  ;;  %v1827_v46 = vmul.f32 %v1250_v37, %v1059_v18  ;;  %v515_v17 = vcombine.high %v507_v13, %v507_v13  ;;  %v1132_v37 = vld [vmem:[%s4997_s1 + $0x2e8] sm:$0xff]  ;;  %v1586_v18 = vrot.slane %v3949_v34, %v3402_v44 }
 0x132   :  { %v2016_v35 = vsel %vm45_vm0, %v1834_v45, 0.0  ;;  %v1995_v11 = vsel %vm45_vm0, %v1827_v46, 0.0  ;;  %v1502_v45 = vrot.slane %v792_v56, %v3402_v44  ;;  %v3954_v39 = vrot.slane %v515_v17, %v3382_v30 }
 0x133   :  { %2176 = vadd.xlane.f32.xlu0 %v2175_v27  ;;  %v2205_v27 = vsel %vm45_vm0, %v1897_v36, 0.0  ;;  %v1122_v36 = vld [vmem:[%s4997_s1 + $0x298] sm:$0xff]  ;;  %v3978_v46 = vadd.f32 %v3380_v29, %v3446_v2  ;;  %v1911_v6 = vmul.f32 %v1586_v18, %v1143_v9 }
 0x134   :  { %1987 = vadd.xlane.f32.xlu1 %v1986_v38  ;;  %v1836_v38 = vmul.f32 %v1286_v28, %v1068_v62  ;;  %v450_v28 = vcombine.high %v3849_v61, %v3849_v61  ;;  %v907_v62 = vcombine.high %v899_v12, %v899_v12  ;;  %v1062_v9 = vld [vmem:[%s4997_s1 + $0xb8] sm:$0xff] }
 0x135   :  { %v458_v56 = vrot.slane %v3978_v46, %v3382_v30 }
 0x136   :  { %v2022_v50 = vsel %vm45_vm0, %v1836_v38, 0.0  ;;  %v1890_v38 = vmul.f32 %v1502_v45, %v1122_v36  ;;  %v1294_v61 = vrot.slane %v450_v28, %v3402_v44  ;;  %v1061_v45 = vld [vmem:[%s4997_s1 + $0xb0] sm:$0xff] }
 0x137   :  { %2146 = vadd.xlane.f32.xlu0 %v2145_v0  ;;  %v1058_v0 = vld [vmem:[%s4997_s1 + $0x98] sm:$0xff]  ;;  %v466_v28 = vcombine.high %v458_v56, %v458_v56 }
 0x138   :  { %2179 = vadd.xlane.f32.xlu1 %v2178_v58  ;;  %v1246_v58 = vrot.slane %v400_v40, %v3402_v44  ;;  %v2184_v13 = vsel %vm45_vm0, %v1890_v38, 0.0  ;;  %v1147_v38 = vld [vmem:[%s4997_s1 + $0x360] sm:$0xff] }
 0x13a   :  { %v1826_v41 = vmul.f32 %v1246_v58, %v1058_v0  ;;  %v1334_v58 = vrot.slane %v3954_v39, %v3402_v44  ;;  %v1080_v0 = vld [vmem:[%s4997_s1 + $0x148] sm:$0xff] }
 0x13b   :  { %2014 = vadd.xlane.f32.xlu0 %v2013_v1  ;;  %v1889_v1 = vmul.f32 %v1498_v63, %v1121_v5  ;;  %v3986_v5 = vrot.slane %v892_v59, %v3382_v30  ;;  %v4043_v59 = vrot.slane %v466_v28, %v3382_v30 }
 0x13c   :  { %2149 = vadd.xlane.f32.xlu1 %v2148_v8  ;;  %v1254_v8 = vrot.slane %v3901_v54, %v3402_v44  ;;  %v1992_v14 = vsel %vm45_vm0, %v1826_v41, 0.0  ;;  %v1848_v41 = vmul.f32 %v1334_v58, %v1080_v0  ;;  %v1124_v58 = vld [vmem:[%s4997_s1 + $0x2a8] sm:$0xff] }
 0x13d   :  { %v2181_v31 = vsel %vm45_vm0, %v1889_v1, 0.0  ;;  %v399_v1 = vcombine.high %v3872_v33, %v3872_v33  ;;  %v761_v33 = vcombine.high %v3795_v24, %v3795_v24 }
 0x13e   :  { %v1828_v21 = vmul.f32 %v1254_v8, %v1060_v60  ;;  %v842_v8 = vcombine.high %v838_v16, %v838_v16  ;;  %v221_v60 = vadd.f32 %v3380_v29, %v3448_v3  ;;  %v2058_v17 = vsel %vm45_vm0, %v1848_v41, 0.0  ;;  %v1134_v3 = vld [vmem:[%s4997_s1 + $0x2f8] sm:$0xff] }
 0x13f   :  { %2020 = vadd.xlane.f32.xlu0 %v2019_v51  ;;  %v1837_v51 = vmul.f32 %v1290_v20, %v1069_v43  ;;  %v1133_v20 = vld [vmem:[%s4997_s1 + $0x2f0] sm:$0xff]  ;;  %v2247_v43 = vsel %vm45_vm0, %v1911_v6, 0.0  ;;  %v1258_v29 = vrot.slane %v399_v1, %v3402_v44 }
 0x140   :  { %2188 = vadd.xlane.f32.xlu1 %v2187_v23  ;;  %v1079_v23 = vld [vmem:[%s4997_s1 + $0x140] sm:$0xff]  ;;  %v843_v0 = vcombine.high %v221_v60, %v221_v60 }
 0x141   :  { %v1847_v22 = vmul.f32 %v1330_v55, %v1079_v23  ;;  %v2025_v40 = vsel %vm45_vm0, %v1837_v51, 0.0  ;;  %v1550_v55 = vrot.slane %v842_v8, %v3402_v44  ;;  %v1901_v23 = vmul.f32 %v1546_v26, %v1133_v20  ;;  %v1135_v26 = vld [vmem:[%s4997_s1 + $0x300] sm:$0xff] }
 0x142   :  { %v4077_v1 = vrot.slane %v843_v0, %v3382_v30 }
 0x143   :  { %2206 = vadd.xlane.f32.xlu0 %v2205_v27  ;;  %v1542_v27 = vrot.slane %v838_v16, %v3402_v44  ;;  %v2055_v32 = vsel %vm45_vm0, %v1847_v22, 0.0  ;;  %v1902_v51 = vmul.f32 %v1550_v55, %v1134_v3  ;;  %v401_v16 = vcombine.high %v3901_v54, %v3901_v54 }
 0x144   :  { %2017 = vadd.xlane.f32.xlu1 %v2016_v35  ;;  %v1998_v35 = vsel %vm45_vm0, %v1828_v21, 0.0  ;;  %v4015_v21 = vrot.slane %v458_v56, %v3382_v30  ;;  %v1829_v22 = vmul.f32 %v1258_v29, %v1061_v45  ;;  %v1125_v29 = vld [vmem:[%s4997_s1 + $0x2b0] sm:$0xff]  ;;  %v4094_v3 = vrot.slane %v4077_v1, %v3382_v30 }
 0x145   :  { %v1900_v63 = vmul.f32 %v1542_v27, %v1132_v37  ;;  %v2220_v54 = vsel %vm45_vm0, %v1902_v51, 0.0  ;;  %v1262_v37 = vrot.slane %v401_v16, %v3402_v44 }
 0x146   :  { %v2001_v18 = vsel %vm45_vm0, %v1829_v22, 0.0  ;;  %v451_v22 = vcombine.high %v3978_v46, %v3978_v46  ;;  %v496_v0 = vcombine.high %v4015_v21, %v4015_v21 }
 0x147   :  { %1990 = vadd.xlane.f32.xlu0 %v1989_v42  ;;  %v3974_v42 = vrot.slane %v907_v62, %v3382_v30  ;;  %v2214_v10 = vsel %vm45_vm0, %v1900_v63, 0.0  ;;  %v2217_v62 = vsel %vm45_vm0, %v1901_v23, 0.0  ;;  %v500_v63 = vcombine.high %v3879_v52, %v3879_v52  ;;  %v1072_v52 = vld [vmem:[%s4997_s1 + $0x108] sm:$0xff] }
 0x148   :  { %2023 = vadd.xlane.f32.xlu1 %v2022_v50  ;;  %v1838_v50 = vmul.f32 %v1294_v61, %v1070_v49  ;;  %v789_v61 = vrot.slane %v761_v33, %v3382_v30  ;;  %v1830_v6 = vmul.f32 %v1262_v37, %v1062_v9  ;;  %v1136_v33 = vld [vmem:[%s4997_s1 + $0x308] sm:$0xff]  ;;  %v545_v23 = vcombine.high %v3914_v47, %v3914_v47 }
 0x149   :  { %v1590_v2 = vrot.slane %v3974_v42, %v3402_v44 }
 0x14a   :  { %v2004_v20 = vsel %vm45_vm0, %v1830_v6, 0.0  ;;  %v1338_v47 = vrot.slane %v545_v23, %v3402_v44  ;;  %v4168_v23 = vld [vmem:[%s4999_s3] ss:$0 sm:$0xff] }
 0x14b   :  { %1996 = vadd.xlane.f32.xlu0 %v1995_v11  ;;  %v1144_v11 = vld [vmem:[%s4997_s1 + $0x348] sm:$0xff] }
 0x14c   :  { %2209 = vadd.xlane.f32.xlu1 %v2208_v7  ;;  %v2028_v7 = vsel %vm45_vm0, %v1838_v50, 0.0  ;;  %v1912_v12 = vmul.f32 %v1590_v2, %v1144_v11  ;;  %v1510_v50 = vrot.slane %v789_v61, %v3402_v44  ;;  %v514_v11 = vrot.slane %v500_v63, %v3382_v30 }
 0x14e   :  { %v2250_v24 = vsel %vm45_vm0, %v1912_v12, 0.0  ;;  %v1892_v8 = vmul.f32 %v1510_v50, %v1124_v58  ;;  %v4104_v16 = vrot.slane %v514_v11, %v3382_v30  ;;  %v1083_v50 = vld [vmem:[%s4997_s1 + $0x160] sm:$0xff] }
 0x14f   :  { %2182 = vadd.xlane.f32.xlu0 %v2181_v31  ;;  %v850_v31 = vrot.slane %v221_v60, %v3382_v30 }
 0x150   :  { %1993 = vadd.xlane.f32.xlu1 %v1992_v14  ;;  %v4010_v14 = vrot.slane %v3986_v5, %v3382_v30  ;;  %v2190_v12 = vsel %vm45_vm0, %v1892_v8, 0.0  ;;  %v1346_v46 = vrot.slane %v4104_v16, %v3402_v44  ;;  %v1082_v8 = vld [vmem:[%s4997_s1 + $0x158] sm:$0xff] }
 0x151   :  { %v858_v27 = vcombine.high %v850_v31, %v850_v31 }
 0x152   :  { %v1602_v36 = vrot.slane %v4010_v14, %v3402_v44 }
 0x153   :  { %2026 = vadd.xlane.f32.xlu0 %v2025_v40  ;;  %v1071_v40 = vld [vmem:[%s4997_s1 + $0x100] sm:$0xff]  ;;  %v4062_v41 = vrot.slane %v858_v27, %v3382_v30 }
 0x154   :  { %1999 = vadd.xlane.f32.xlu1 %v1998_v35  ;;  %v1298_v35 = vrot.slane %v4015_v21, %v3402_v44  ;;  %v1915_v49 = vmul.f32 %v1602_v36, %v1147_v38  ;;  %v1126_v36 = vld [vmem:[%s4997_s1 + $0x2b8] sm:$0xff]  ;;  %v516_v38 = vcombine.high %v514_v11, %v514_v11  ;;  %v1139_v27 = vld [vmem:[%s4997_s1 + $0x320] sm:$0xff]  ;;  %v1145_v21 = vld [vmem:[%s4997_s1 + $0x350] sm:$0xff] }
 0x156   :  { %v2259_v4 = vsel %vm45_vm0, %v1915_v49, 0.0 }
 0x157   :  { %2056 = vadd.xlane.f32.xlu0 %v2055_v32  ;;  %v4046_v32 = vrot.slane %v850_v31, %v3382_v30 }
 0x158   :  { %2185 = vadd.xlane.f32.xlu1 %v2184_v13  ;;  %v1839_v13 = vmul.f32 %v1298_v35, %v1071_v40  ;;  %v1570_v35 = vrot.slane %v4094_v3, %v3402_v44 }
 0x159   :  { %v1554_v56 = vrot.slane %v4046_v32, %v3402_v44 }
 0x15a   :  { %v2031_v2 = vsel %vm45_vm0, %v1839_v13, 0.0  ;;  %v1907_v58 = vmul.f32 %v1570_v35, %v1139_v27 }
 0x15b   :  { %2215 = vadd.xlane.f32.xlu0 %v2214_v10  ;;  %v791_v10 = vcombine.high %v3814_v48, %v3814_v48  ;;  %v1903_v48 = vmul.f32 %v1554_v56, %v1135_v26 }
 0x15c   :  { %2029 = vadd.xlane.f32.xlu1 %v2028_v7  ;;  %v1302_v7 = vrot.slane %v4043_v59, %v3402_v44  ;;  %v2235_v26 = vsel %vm45_vm0, %v1907_v58, 0.0 }
 0x15d   :  { %v1514_v55 = vrot.slane %v791_v10, %v3402_v44  ;;  %v939_v10 = vcombine.high %v3974_v42, %v3974_v42  ;;  %v1084_v42 = vld [vmem:[%s4997_s1 + $0x168] sm:$0xff] }
 0x15e   :  { %v1840_v60 = vmul.f32 %v1302_v7, %v1072_v52  ;;  %v1851_v7 = vmul.f32 %v1346_v46, %v1083_v50 }
 0x15f   :  { %2248 = vadd.xlane.f32.xlu0 %v2247_v43  ;;  %v1558_v43 = vrot.slane %v4062_v41, %v3402_v44  ;;  %v1893_v51 = vmul.f32 %v1514_v55, %v1125_v29  ;;  %v4172_v29 = vadd.f32 %v4168_v23, %v3636_v15  ;;  %v1146_v15 = vld [vmem:[%s4997_s1 + $0x358] sm:$0xff] }
 0x160   :  { %2059 = vadd.xlane.f32.xlu1 %v2058_v17  ;;  %v793_v17 = vcombine.high %v789_v61, %v789_v61  ;;  %v2034_v45 = vsel %vm45_vm0, %v1840_v60, 0.0 }
 0x161   :  { %v1904_v28 = vmul.f32 %v1558_v43, %v1136_v33  ;;  %v2193_v49 = vsel %vm45_vm0, %v1893_v51, 0.0  ;;  %v2067_v43 = vsel %vm45_vm0, %v1851_v7, 0.0  ;;  %v498_v51 = vcombine.high %v4043_v59, %v4043_v59 }
 0x162   :  { %v1518_v31 = vrot.slane %v793_v17, %v3402_v44  ;;  %v888_v59 = vcombine.high %v4046_v32, %v4046_v32 }
 0x163   :  { %2218 = vadd.xlane.f32.xlu0 %v2217_v62  ;;  %v1081_v62 = vld [vmem:[%s4997_s1 + $0x150] sm:$0xff]  ;;  %v2226_v61 = vsel %vm45_vm0, %v1904_v28, 0.0 }
 0x164   :  { %2251 = vadd.xlane.f32.xlu1 %v2250_v24  ;;  %v2223_v24 = vsel %vm45_vm0, %v1903_v48, 0.0  ;;  %v1894_v40 = vmul.f32 %v1518_v31, %v1126_v36  ;;  %v1849_v37 = vmul.f32 %v1338_v47, %v1081_v62 }
 0x166   :  { %v2061_v6 = vsel %vm45_vm0, %v1849_v37, 0.0 }
 0x167   :  { %2002 = vadd.xlane.f32.xlu0 %v2001_v18  ;;  %v937_v18 = vcombine.high %v3949_v34, %v3949_v34  ;;  %v465_v34 = vrot.slane %v451_v22, %v3382_v30 }
 0x168   :  { %2221 = vadd.xlane.f32.xlu1 %v2220_v54  ;;  %v547_v54 = vcombine.high %v3954_v39, %v3954_v39  ;;  %v2196_v39 = vsel %vm45_vm0, %v1894_v40, 0.0 }
 0x169   :  { %v4163_v48 = vrot.slane %v465_v34, %v3382_v30  ;;  %v467_v55 = vcombine.high %v465_v34, %v465_v34  ;;  %v546_v34 = vcombine.high %v4104_v16, %v4104_v16 }
 0x16a   :  { %v1342_v63 = vrot.slane %v547_v54, %v3402_v44  ;;  %v605_v54 = vrot.slane %v4172_v29, %v3382_v30 }
 0x16b   :  { %2032 = vadd.xlane.f32.xlu0 %v2031_v2  ;;  %v1594_v2 = vrot.slane %v937_v18, %v3402_v44  ;;  %v1310_v18 = vrot.slane %v498_v51, %v3402_v44  ;;  %v4209_v58 = vrot.slane %v467_v55, %v3382_v30 }
 0x16c   :  { %2260 = vadd.xlane.f32.xlu1 %v2259_v4  ;;  %v4134_v4 = vrot.slane %v516_v38, %v3382_v30  ;;  %v1850_v11 = vmul.f32 %v1342_v63, %v1082_v8  ;;  %v1562_v63 = vrot.slane %v888_v59, %v3402_v44  ;;  %v1137_v8 = vld [vmem:[%s4997_s1 + $0x310] sm:$0xff] }
 0x16d   :  { %v1913_v17 = vmul.f32 %v1594_v2, %v1145_v21  ;;  %v4223_v2 = vrot.slane %v605_v54, %v3382_v30 }
 0x16e   :  { %v1350_v60 = vrot.slane %v4134_v4, %v3402_v44  ;;  %v2064_v36 = vsel %vm45_vm0, %v1850_v11, 0.0  ;;  %v890_v11 = vcombine.high %v4062_v41, %v4062_v41  ;;  %v1085_v41 = vld [vmem:[%s4997_s1 + $0x170] sm:$0xff]  ;;  %v548_v51 = vcombine.high %v4134_v4, %v4134_v4 }
 0x16f   :  { %2191 = vadd.xlane.f32.xlu0 %v2190_v12  ;;  %v1073_v12 = vld [vmem:[%s4997_s1 + $0x110] sm:$0xff]  ;;  %v2253_v38 = vsel %vm45_vm0, %v1913_v17, 0.0  ;;  %v1354_v17 = vrot.slane %v546_v34, %v3402_v44 }
 0x170   :  { %2005 = vadd.xlane.f32.xlu1 %v2004_v20  ;;  %v1306_v20 = vrot.slane %v496_v0, %v3402_v44  ;;  %v1852_v22 = vmul.f32 %v1350_v60, %v1084_v42  ;;  %v4214_v0 = vadd.f32 %v4168_v23, %v3679_v53  ;;  %v1905_v60 = vmul.f32 %v1562_v63, %v1137_v8 }
 0x171   :  { %v613_v42 = vcombine.high %v605_v54, %v605_v54 }
 0x172   :  { %v1841_v62 = vmul.f32 %v1306_v20, %v1073_v12  ;;  %v2070_v50 = vsel %vm45_vm0, %v1852_v22, 0.0  ;;  %v1566_v22 = vrot.slane %v890_v11, %v3402_v44 }
 0x173   :  { %2224 = vadd.xlane.f32.xlu0 %v2223_v24  ;;  %v1598_v24 = vrot.slane %v939_v10, %v3402_v44 }
 0x174   :  { %2035 = vadd.xlane.f32.xlu1 %v2034_v45  ;;  %v2037_v32 = vsel %vm45_vm0, %v1841_v62, 0.0 }
 0x175   :  { %v1914_v46 = vmul.f32 %v1598_v24, %v1146_v15  ;;  %v1095_v24 = vld [vmem:[%s4997_s1 + $0x1c0] sm:$0xff]  ;;  %v2229_v15 = vsel %vm45_vm0, %v1905_v60, 0.0 }
 0x176   :  { %v1159_v60 = vld [vmem:[%s4997_s1 + $0x3c0] sm:$0xff] }
 0x177   :  { %2194 = vadd.xlane.f32.xlu0 %v2193_v49  ;;  %v1075_v49 = vld [vmem:[%s4997_s1 + $0x120] sm:$0xff]  ;;  %v2256_v53 = vsel %vm45_vm0, %v1914_v46, 0.0 }
 0x178   :  { %2227 = vadd.xlane.f32.xlu1 %v2226_v61  ;;  %v1961_v9 = vpop.xlane.xlu0 %1960  ;;  %v1314_v61 = vrot.slane %v4163_v48, %v3402_v44 }
 0x179   :  { %v4124_v13 = vpop.xlane.xlu1 %2152  ;;  %v2484_v45 = vrot.slane %v1961_v9, %v3375_v25  ;;  %v1074_v9 = vld [vmem:[%s4997_s1 + $0x118] sm:$0xff] }
 0x17a   :  { %v1842_v10 = vmul.f32 %v1310_v18, %v1074_v9  ;;  %v2740_v16 = vrot.slane %v4124_v13, %v3375_v25  ;;  %v1076_v13 = vld [vmem:[%s4997_s1 + $0x128] sm:$0xff] }
 0x17b   :  { %2062 = vadd.xlane.f32.xlu0 %v2061_v6  ;;  %v908_v6 = vcombine.high %v3986_v5, %v3986_v5  ;;  %v1318_v5 = vrot.slane %v4209_v58, %v3402_v44  ;;  %v1148_v9 = vld [vmem:[%s4997_s1 + $0x368] sm:$0xff] }
 0x17c   :  { %2197 = vadd.xlane.f32.xlu1 %v2196_v39  ;;  %v4147_v52 = vpop.xlane.xlu0 %1936  ;;  %v1843_v39 = vmul.f32 %v1314_v61, %v1075_v49  ;;  %v4281_v49 = vrot.slane %v613_v42, %v3382_v30 }
 0x17d   :  { %v4142_v56 = vpop.xlane.xlu1 %2128  ;;  %v1844_v62 = vmul.f32 %v1318_v5, %v1076_v13  ;;  %v2452_v63 = vrot.slane %v4147_v52, %v3375_v25  ;;  %v859_v13 = vcombine.high %v4077_v1, %v4077_v1  ;;  %v938_v1 = vcombine.high %v4010_v14, %v4010_v14 }
 0x17e   :  { %v2043_v20 = vsel %vm45_vm0, %v1843_v39, 0.0  ;;  %v1358_v39 = vrot.slane %v548_v51, %v3402_v44  ;;  %v1398_v5 = vrot.slane %v4281_v49, %v3402_v44  ;;  %v2708_v14 = vrot.slane %v4142_v56, %v3375_v25 }
 0x17f   :  { %2068 = vadd.xlane.f32.xlu0 %v2067_v43  ;;  %v997_v43 = vrot.slane %v4214_v0, %v3382_v30  ;;  %v497_v56 = vcombine.high %v4163_v48, %v4163_v48 }
 0x180   :  { %2236 = vadd.xlane.f32.xlu1 %v2235_v26  ;;  %v1967_v31 = vpop.xlane.xlu0 %1966 }
 0x181   :  { %v1964_v33 = vpop.xlane.xlu1 %1963  ;;  %v2492_v47 = vrot.slane %v1967_v31, %v3375_v25 }
 0x182   :  { %v2488_v28 = vrot.slane %v1964_v33, %v3375_v25  ;;  %v1394_v33 = vrot.slane %v4223_v2, %v3402_v44 }
 0x183   :  { %2254 = vadd.xlane.f32.xlu0 %v2253_v38  ;;  %v1138_v38 = vld [vmem:[%s4997_s1 + $0x318] sm:$0xff] }
 0x184   :  { %v2975_v35 = vsel %vm2961_vm1, %v2488_v28, %v2484_v45  ;;  %2065 = vadd.xlane.f32.xlu1 %v2064_v36  ;;  %v4200_v37 = vpop.xlane.xlu0 %1972  ;;  %v4252_v45 = vrot.slane %v908_v6, %v3382_v30  ;;  %v4256_v28 = vadd.f32 %v4168_v23, %v3643_v19  ;;  %v2040_v36 = vsel %vm45_vm0, %v1842_v10, 0.0 }
 0x185   :  { %v4191_v40 = vsel %vm2963_vm2, %v2492_v47, %v2975_v35  ;;  %v4193_v27 = vpop.xlane.xlu1 %2164  ;;  %v4268_v19 = vrot.slane %v997_v43, %v3382_v30  ;;  %v1853_v35 = vmul.f32 %v1354_v17, %v1085_v41  ;;  %v1863_v59 = vmul.f32 %v1394_v33, %v1095_v24 }
 0x186   :  { %v1606_v54 = vrot.slane %v4252_v45, %v3402_v44  ;;  %v4285_v46 = vrot.slane %v4256_v28, %v3382_v30  ;;  %v2046_v6 = vsel %vm45_vm0, %v1844_v62, 0.0  ;;  %v1906_v8 = vmul.f32 %v1566_v22, %v1138_v38 }
 0x187   :  { %2038 = vadd.xlane.f32.xlu0 %v2037_v32  ;;  %v1005_v32 = vcombine.high %v997_v43, %v997_v43  ;;  %v1096_v43 = vld [vmem:[%s4997_s1 + $0x1c8] sm:$0xff] }
 0x188   :  { %2071 = vadd.xlane.f32.xlu1 %v2070_v50  ;;  %v2156_v21 = vpop.xlane.xlu0 %2155  ;;  %v4289_v50 = vadd.f32 %v4168_v23, %v3683_v57  ;;  %v2073_v23 = vsel %vm45_vm0, %v1853_v35, 0.0  ;;  %v2232_v42 = vsel %vm45_vm0, %v1906_v8, 0.0  ;;  %v564_v33 = vcombine.high %v4285_v46, %v4285_v46 }
 0x189   :  { %v4220_v7 = vpop.xlane.xlu1 %1942  ;;  %v2744_v26 = vrot.slane %v2156_v21, %v3375_v25  ;;  %v1086_v21 = vld [vmem:[%s4997_s1 + $0x178] sm:$0xff]  ;;  %v4329_v41 = vrot.slane %v1005_v32, %v3382_v30  ;;  %v4344_v62 = vrot.slane %v4285_v46, %v3382_v30  ;;  %v1160_v32 = vld [vmem:[%s4997_s1 + $0x3c8] sm:$0xff] }
 0x18a   :  { %v2460_v57 = vrot.slane %v4220_v7, %v3375_v25 }
 0x18b   :  { %v3031_v12 = vsel %vm2961_vm1, %v2744_v26, %v2740_v16  ;;  %2044 = vadd.xlane.f32.xlu0 %v2043_v20  ;;  %v2103_v16 = vsel %vm45_vm0, %v1863_v59, 0.0  ;;  %v1916_v26 = vmul.f32 %v1606_v54, %v1148_v9  ;;  %v1854_v20 = vmul.f32 %v1358_v39, %v1086_v21 }
 0x18c   :  { %2257 = vadd.xlane.f32.xlu1 %v2256_v53  ;;  %v2159_v31 = vpop.xlane.xlu0 %2158  ;;  %v1650_v53 = vrot.slane %v4268_v19, %v3402_v44  ;;  %v1654_v59 = vrot.slane %v4329_v41, %v3402_v44  ;;  %v499_v54 = vcombine.high %v4209_v58, %v4209_v58  ;;  %v4375_v21 = vrot.slane %v564_v33, %v3382_v30 }
 0x18d   :  { %v4244_v55 = vpop.xlane.xlu1 %2134  ;;  %v2748_v47 = vrot.slane %v2159_v31, %v3375_v25  ;;  %v4335_v31 = vrot.slane %v4289_v50, %v3382_v30  ;;  %v2076_v35 = vsel %vm45_vm0, %v1854_v20, 0.0  ;;  %v941_v20 = vcombine.high %v4289_v50, %v4289_v50 }
 0x18e   :  { %v1927_v51 = vmul.f32 %v1650_v53, %v1159_v60  ;;  %v2716_v46 = vrot.slane %v4244_v55, %v3375_v25  ;;  %v1077_v60 = vld [vmem:[%s4997_s1 + $0x130] sm:$0xff]  ;;  %v1362_v50 = vrot.slane %v4344_v62, %v3402_v44 }
 0x18f   :  { %v4274_v4 = vsel %vm2963_vm2, %v2748_v47, %v3031_v12  ;;  %2230 = vadd.xlane.f32.xlu0 %v2229_v15  ;;  %v2500_v12 = vrot.slane %v4200_v37, %v3375_v25  ;;  %v1864_v47 = vmul.f32 %v1398_v5, %v1096_v43  ;;  %v956_v39 = vcombine.high %v4335_v31, %v4335_v31 }
 0x190   :  { %2041 = vadd.xlane.f32.xlu1 %v2040_v36  ;;  %v1940_v18 = vpop.xlane.xlu0 %1939  ;;  %v2295_v55 = vsel %vm45_vm0, %v1927_v51, 0.0  ;;  %v1322_v5 = vrot.slane %v497_v56, %v3402_v44 }
 0x191   :  { %v4276_v61 = vpop.xlane.xlu1 %2140  ;;  %v2456_v34 = vrot.slane %v1940_v18, %v3375_v25  ;;  %v1610_v18 = vrot.slane %v938_v1, %v3402_v44 }
 0x193   :  { %v2962_v52 = vsel %vm2961_vm1, %v2456_v34, %v2452_v63  ;;  %2074 = vadd.xlane.f32.xlu0 %v2073_v23  ;;  %v2106_v34 = vsel %vm45_vm0, %v1864_v47, 0.0  ;;  %v2756_v23 = vrot.slane %v4193_v27, %v3375_v25  ;;  %v1087_v47 = vld [vmem:[%s4997_s1 + $0x180] sm:$0xff] }
 0x194   :  { %2047 = vadd.xlane.f32.xlu1 %v2046_v6  ;;  %v4312_v7 = vpop.xlane.xlu0 %1948  ;;  %v4321_v17 = vsel %vm2963_vm2, %v2460_v57, %v2962_v52  ;;  %v1149_v6 = vld [vmem:[%s4997_s1 + $0x370] sm:$0xff]  ;;  %v1928_v52 = vmul.f32 %v1654_v59, %v1160_v32 }
 0x195   :  { %v1970_v10 = vpop.xlane.xlu1 %1969  ;;  %v2468_v1 = vrot.slane %v4312_v7, %v3375_v25  ;;  %v1088_v7 = vld [vmem:[%s4997_s1 + $0x188] sm:$0xff] }
 0x196   :  { %v2496_v11 = vrot.slane %v1970_v10, %v3375_v25  ;;  %v1326_v10 = vrot.slane %v499_v54, %v3402_v44  ;;  %v1855_v54 = vmul.f32 %v1362_v50, %v1087_v47 }
 0x197   :  { %2104 = vadd.xlane.f32.xlu0 %v2103_v16 }
 0x198   :  { %v2977_v24 = vsel %vm2965_vm3, %v2496_v11, %v4191_v40  ;;  %2233 = vadd.xlane.f32.xlu1 %v2232_v42  ;;  %v2132_v15 = vpop.xlane.xlu0 %2131  ;;  %v2262_v40 = vsel %vm45_vm0, %v1916_v26, 0.0  ;;  %v1917_v26 = vmul.f32 %v1610_v18, %v1149_v6  ;;  %v1078_v11 = vld [vmem:[%s4997_s1 + $0x138] sm:$0xff] }
 0x199   :  { %v1976_v37 = vpop.xlane.xlu1 %1975  ;;  %v2978_v36 = vsel %vm2967_vm4, %v2500_v12, %v2977_v24  ;;  %v2712_v38 = vrot.slane %v2132_v15, %v3375_v25  ;;  %v4398_v12 = vrot.slane %v956_v39, %v3382_v30  ;;  %v887_v24 = vrot.slane %v859_v13, %v3382_v30 }
 0x19a   :  { %v2504_v22 = vrot.slane %v1976_v37, %v3375_v25  ;;  %v2298_v37 = vsel %vm45_vm0, %v1928_v52, 0.0  ;;  %v1846_v51 = vmul.f32 %v1326_v10, %v1078_v11  ;;  %v2265_v15 = vsel %vm45_vm0, %v1917_v26, 0.0 }
 0x19b   :  { %v3024_v58 = vsel %vm2961_vm1, %v2712_v38, %v2708_v14  ;;  %2263 = vadd.xlane.f32.xlu0 %v2262_v40  ;;  %v1845_v13 = vmul.f32 %v1322_v5, %v1077_v60  ;;  %v598_v40 = vcombine.high %v4172_v29, %v4172_v29  ;;  %v4424_v38 = vrot.slane %v941_v20, %v3382_v30  ;;  %v1142_v20 = vld [vmem:[%s4997_s1 + $0x338] sm:$0xff] }
 0x19c   :  { %2077 = vadd.xlane.f32.xlu1 %v2076_v35  ;;  %v2979_v9 = vsel %vm2969_vm5, %v2504_v22, %v2978_v36  ;;  %v1979_v48 = vpop.xlane.xlu0 %1978  ;;  %v4378_v57 = vsel %vm2963_vm2, %v2716_v46, %v3024_v58  ;;  %v1366_v36 = vrot.slane %v4375_v21, %v3402_v44  ;;  %v1622_v46 = vrot.slane %v4398_v12, %v3402_v44 }
 0x19d   :  { %v2162_v63 = vpop.xlane.xlu1 %2161  ;;  %v2508_v53 = vrot.slane %v1979_v48, %v3375_v25  ;;  %v2052_v32 = vsel %vm45_vm0, %v1846_v51, 0.0  ;;  %v891_v29 = vcombine.high %v887_v24, %v887_v24  ;;  %v2049_v39 = vsel %vm45_vm0, %v1845_v13, 0.0 }
 0x19e   :  { %v2752_v8 = vrot.slane %v2162_v63, %v3375_v25  ;;  %v1856_v56 = vmul.f32 %v1366_v36, %v1088_v7  ;;  %v1574_v58 = vrot.slane %v887_v24, %v3402_v44  ;;  %v1152_v63 = vld [vmem:[%s4997_s1 + $0x388] sm:$0xff]  ;;  %v4450_v48 = vrot.slane %v4424_v38, %v3382_v30  ;;  %v1151_v24 = vld [vmem:[%s4997_s1 + $0x380] sm:$0xff] }
 0x19f   :  { %2296 = vadd.xlane.f32.xlu0 %v2295_v55  ;;  %v2980_v43 = vsel %vm2971_vm6, %v2508_v53, %v2979_v9  ;;  %v4433_v9 = vrot.slane %v4335_v31, %v3382_v30  ;;  %v1140_v31 = vld [vmem:[%s4997_s1 + $0x328] sm:$0xff]  ;;  %v2079_v52 = vsel %vm45_vm0, %v1855_v54, 0.0  ;;  %v1582_v26 = vrot.slane %v891_v29, %v3402_v44 }
 0x1a0   :  { %v3033_v16 = vsel %vm2965_vm3, %v2752_v8, %v4274_v4  ;;  %2107 = vadd.xlane.f32.xlu1 %v2106_v34  ;;  %v4401_v33 = vpop.xlane.xlu0 %2008  ;;  %v612_v34 = vrot.slane %v598_v40, %v3382_v30  ;;  %v2082_v10 = vsel %vm45_vm0, %v1856_v56, 0.0  ;;  %v1908_v5 = vmul.f32 %v1574_v58, %v1140_v31  ;;  %v1098_v31 = vld [vmem:[%s4997_s1 + $0x1d8] sm:$0xff] }
 0x1a1   :  { %v1946_v27 = vpop.xlane.xlu1 %1945  ;;  %v3034_v4 = vsel %vm2967_vm4, %v2756_v23, %v3033_v16  ;;  %v1920_v16 = vmul.f32 %v1622_v46, %v1152_v63  ;;  %v1618_v11 = vrot.slane %v4433_v9, %v3402_v44  ;;  %v1634_v51 = vrot.slane %v4450_v48, %v3402_v44 }
 0x1a2   :  { %v2464_v42 = vrot.slane %v1946_v27, %v3375_v25  ;;  %v889_v27 = vcombine.high %v4094_v3, %v4094_v3  ;;  %v1910_v36 = vmul.f32 %v1582_v26, %v1142_v20 }
 0x1a3   :  { %2266 = vadd.xlane.f32.xlu0 %v2265_v15  ;;  %v2274_v47 = vsel %vm45_vm0, %v1920_v16, 0.0  ;;  %v2238_v15 = vsel %vm45_vm0, %v1908_v5, 0.0  ;;  %v1919_v13 = vmul.f32 %v1618_v11, %v1151_v24 }
 0x1a4   :  { %v2966_v22 = vsel %vm2965_vm3, %v2464_v42, %v4321_v17  ;;  %2299 = vadd.xlane.f32.xlu1 %v2298_v37  ;;  %v2168_v59 = vpop.xlane.xlu0 %2167  ;;  %v549_v42 = vcombine.high %v4256_v28, %v4256_v28  ;;  %v2548_v37 = vrot.slane %v4401_v33, %v3375_v25  ;;  %v1578_v7 = vrot.slane %v889_v27, %v3402_v44 }
 0x1a5   :  { %v1952_v35 = vpop.xlane.xlu1 %1951  ;;  %v2968_v14 = vsel %vm2967_vm4, %v2468_v1, %v2966_v22  ;;  %v2760_v18 = vrot.slane %v2168_v59, %v3375_v25  ;;  %v643_v1 = vcombine.high %v4223_v2, %v4223_v2  ;;  %v1155_v22 = vld [vmem:[%s4997_s1 + $0x3a0] sm:$0xff]  ;;  %v645_v2 = vcombine.high %v4281_v49, %v4281_v49 }
 0x1a6   :  { %v2472_v17 = vrot.slane %v1952_v35, %v3375_v25  ;;  %v563_v40 = vrot.slane %v549_v42, %v3382_v30  ;;  %v4496_v49 = vrot.slane %v612_v34, %v3382_v30  ;;  %v2244_v56 = vsel %vm45_vm0, %v1910_v36, 0.0  ;;  %v1100_v42 = vld [vmem:[%s4997_s1 + $0x1e8] sm:$0xff] }
 0x1a7   :  { %2050 = vadd.xlane.f32.xlu0 %v2049_v39  ;;  %v3035_v8 = vsel %vm2969_vm5, %v2760_v18, %v3034_v4  ;;  %v614_v4 = vcombine.high %v612_v34, %v612_v34  ;;  %v1923_v18 = vmul.f32 %v1634_v51, %v1155_v22  ;;  %v1406_v29 = vrot.slane %v645_v2, %v3402_v44 }
 0x1a8   :  { %2053 = vadd.xlane.f32.xlu1 %v2052_v32  ;;  %v4441_v55 = vsel %vm2969_vm5, %v2472_v17, %v2968_v14  ;;  %v2201_v23 = vpop.xlane.xlu0 %2200  ;;  %v1141_v14 = vld [vmem:[%s4997_s1 + $0x330] sm:$0xff]  ;;  %v2271_v63 = vsel %vm45_vm0, %v1919_v13, 0.0  ;;  %v596_v27 = vcombine.high %v4375_v21, %v4375_v21  ;;  %v1099_v21 = vld [vmem:[%s4997_s1 + $0x1e0] sm:$0xff]  ;;  %v2724_v36 = vrot.slane %v4276_v61, %v3375_v25 }
 0x1a9   :  { %v1982_v6 = vpop.xlane.xlu1 %1981  ;;  %v2804_v17 = vrot.slane %v2201_v23, %v3375_v25  ;;  %v4504_v39 = vrot.slane %v614_v4, %v3382_v30  ;;  %v1909_v34 = vmul.f32 %v1578_v7, %v1141_v14  ;;  %v1097_v23 = vld [vmem:[%s4997_s1 + $0x1d0] sm:$0xff]  ;;  %v2283_v5 = vsel %vm45_vm0, %v1923_v18, 0.0 }
 0x1aa   :  { %v2512_v53 = vrot.slane %v1982_v6, %v3375_v25  ;;  %v1402_v6 = vrot.slane %v643_v1, %v3402_v44  ;;  %v1866_v11 = vmul.f32 %v1406_v29, %v1098_v31  ;;  %v594_v1 = vcombine.high %v4344_v62, %v4344_v62 }
 0x1ab   :  { %2080 = vadd.xlane.f32.xlu0 %v2079_v52  ;;  %v565_v52 = vcombine.high %v563_v40, %v563_v40  ;;  %v1414_v20 = vrot.slane %v4504_v39, %v3402_v44  ;;  %v2241_v4 = vsel %vm45_vm0, %v1909_v34, 0.0  ;;  %v4564_v61 = vrot.slane %v563_v40, %v3382_v30 }
 0x1ac   :  { %2083 = vadd.xlane.f32.xlu1 %v2082_v10  ;;  %v4464_v60 = vsel %vm2973_vm7, %v2512_v53, %v2980_v43  ;;  %v2171_v3 = vpop.xlane.xlu0 %2170  ;;  %v1035_v10 = vcombine.high %v4268_v19, %v4268_v19  ;;  %v1410_v19 = vrot.slane %v4496_v49, %v3402_v44  ;;  %v2112_v51 = vsel %vm45_vm0, %v1866_v11, 0.0 }
 0x1ad   :  { %v2012_v50 = vpop.xlane.xlu1 %2011  ;;  %v2764_v28 = vrot.slane %v2171_v3, %v3375_v25  ;;  %v4546_v3 = vrot.slane %v565_v52, %v3382_v30  ;;  %v1370_v29 = vrot.slane %v594_v1, %v3402_v44  ;;  %v646_v52 = vcombine.high %v4504_v39, %v4504_v39  ;;  %v1154_v39 = vld [vmem:[%s4997_s1 + $0x398] sm:$0xff] }
 0x1ae   :  { %v2552_v43 = vrot.slane %v2012_v50, %v3375_v25  ;;  %v1867_v2 = vmul.f32 %v1410_v19, %v1099_v21  ;;  %v1658_v62 = vrot.slane %v1035_v10, %v3402_v44  ;;  %v986_v11 = vcombine.high %v4433_v9, %v4433_v9 }
 0x1af   :  { %2239 = vadd.xlane.f32.xlu0 %v2238_v15  ;;  %v3036_v59 = vsel %vm2971_vm6, %v2764_v28, %v3035_v8  ;;  %v1868_v28 = vmul.f32 %v1414_v20, %v1100_v42  ;;  %v1090_v15 = vld [vmem:[%s4997_s1 + $0x198] sm:$0xff]  ;;  %v1422_v1 = vrot.slane %v646_v52, %v3402_v44 }
 0x1b0   :  { %v4486_v33 = vsel %vm2961_vm1, %v2552_v43, %v2548_v37  ;;  %2275 = vadd.xlane.f32.xlu1 %v2274_v47  ;;  %v1955_v54 = vpop.xlane.xlu0 %1954  ;;  %v1374_v47 = vrot.slane %v596_v27, %v3402_v44 }
 0x1b1   :  { %v2204_v35 = vpop.xlane.xlu1 %2203  ;;  %v2476_v32 = vrot.slane %v1955_v54, %v3375_v25  ;;  %v1382_v54 = vrot.slane %v4546_v3, %v3402_v44 }
 0x1b2   :  { %v2808_v46 = vrot.slane %v2204_v35, %v3375_v25  ;;  %v1161_v35 = vld [vmem:[%s4997_s1 + $0x3d0] sm:$0xff]  ;;  %v1858_v18 = vmul.f32 %v1374_v47, %v1090_v15 }
 0x1b3   :  { %2272 = vadd.xlane.f32.xlu0 %v2271_v63  ;;  %v2972_v53 = vsel %vm2971_vm6, %v2476_v32, %v4441_v55  ;;  %v1865_v55 = vmul.f32 %v1402_v6, %v1097_v23  ;;  %v988_v32 = vcombine.high %v4398_v12, %v4398_v12  ;;  %v1929_v40 = vmul.f32 %v1658_v62, %v1161_v35  ;;  %v1092_v63 = vld [vmem:[%s4997_s1 + $0x1a8] sm:$0xff]  ;;  %v1089_v12 = vld [vmem:[%s4997_s1 + $0x190] sm:$0xff] }
 0x1b4   :  { %v4507_v58 = vsel %vm2961_vm1, %v2808_v46, %v2804_v17  ;;  %2245 = vadd.xlane.f32.xlu1 %v2244_v56  ;;  %v4521_v16 = vpop.xlane.xlu0 %1984  ;;  %v2115_v56 = vsel %vm45_vm0, %v1867_v2, 0.0  ;;  %v1378_v23 = vrot.slane %v4564_v61, %v3402_v44  ;;  %v2088_v10 = vsel %vm45_vm0, %v1858_v18, 0.0 }
 0x1b5   :  { %v2174_v8 = vpop.xlane.xlu1 %2173  ;;  %v2109_v22 = vsel %vm45_vm0, %v1865_v55, 0.0  ;;  %v2301_v20 = vsel %vm45_vm0, %v1929_v40, 0.0  ;;  %v1857_v27 = vmul.f32 %v1370_v29, %v1089_v12  ;;  %v644_v2 = vcombine.high %v4496_v49, %v4496_v49 }
 0x1b6   :  { %v2768_v26 = vrot.slane %v2174_v8, %v3375_v25  ;;  %v990_v62 = vcombine.high %v4214_v0, %v4214_v0 }
 0x1b7   :  { %2242 = vadd.xlane.f32.xlu0 %v2241_v4  ;;  %v1418_v18 = vrot.slane %v644_v2, %v3402_v44 }
 0x1b8   :  { %2284 = vadd.xlane.f32.xlu1 %v2283_v5  ;;  %v4536_v50 = vsel %vm2973_vm7, %v2768_v26, %v3036_v59  ;;  %v2138_v37 = vpop.xlane.xlu0 %2137  ;;  %v1091_v26 = vld [vmem:[%s4997_s1 + $0x1a0] sm:$0xff]  ;;  %v1630_v5 = vrot.slane %v988_v32, %v3402_v44  ;;  %v595_v32 = vcombine.high %v4564_v61, %v4564_v61  ;;  %v1004_v40 = vrot.slane %v990_v62, %v3382_v30 }
 0x1b9   :  { %v4538_v24 = vpop.xlane.xlu1 %2212  ;;  %v2720_v43 = vrot.slane %v2138_v37, %v3375_v25  ;;  %v1859_v21 = vmul.f32 %v1378_v23, %v1091_v26  ;;  %v1037_v61 = vcombine.high %v4329_v41, %v4329_v41  ;;  %v1150_v26 = vld [vmem:[%s4997_s1 + $0x378] sm:$0xff]  ;;  %v1093_v41 = vld [vmem:[%s4997_s1 + $0x1b0] sm:$0xff] }
 0x1bb   :  { %v3026_v13 = vsel %vm2965_vm3, %v2720_v43, %v4378_v57  ;;  %2110 = vadd.xlane.f32.xlu0 %v2109_v22  ;;  %v2118_v57 = vsel %vm45_vm0, %v1868_v28, 0.0  ;;  %v1922_v43 = vmul.f32 %v1630_v5, %v1154_v39  ;;  %v597_v28 = vcombine.high %v4546_v3, %v4546_v3  ;;  %v1153_v3 = vld [vmem:[%s4997_s1 + $0x390] sm:$0xff] }
 0x1bc   :  { %2113 = vadd.xlane.f32.xlu1 %v2112_v51  ;;  %v3027_v14 = vsel %vm2967_vm4, %v2724_v36, %v3026_v13  ;;  %v2144_v59 = vpop.xlane.xlu0 %2143  ;;  %v1102_v51 = vld [vmem:[%s4997_s1 + $0x1f8] sm:$0xff]  ;;  %v2085_v36 = vsel %vm45_vm0, %v1857_v27, 0.0  ;;  %v1626_v22 = vrot.slane %v986_v11, %v3402_v44  ;;  %v1006_v5 = vcombine.high %v1004_v40, %v1004_v40 }
 0x1bd   :  { %v1958_v7 = vpop.xlane.xlu1 %1957  ;;  %v2728_v46 = vrot.slane %v2144_v59, %v3375_v25  ;;  %v2091_v59 = vsel %vm45_vm0, %v1859_v21, 0.0  ;;  %v1870_v49 = vmul.f32 %v1422_v1, %v1102_v51  ;;  %v2280_v0 = vsel %vm45_vm0, %v1922_v43, 0.0 }
 0x1be   :  { %v2480_v17 = vrot.slane %v1958_v7, %v3375_v25  ;;  %v957_v7 = vcombine.high %v4424_v38, %v4424_v38  ;;  %v1094_v38 = vld [vmem:[%s4997_s1 + $0x1b8] sm:$0xff] }
 0x1bf   :  { %v3028_v6 = vsel %vm2969_vm5, %v2728_v46, %v3027_v14  ;;  %2116 = vadd.xlane.f32.xlu0 %v2115_v56  ;;  %v940_v46 = vcombine.high %v4252_v45, %v4252_v45 }
 0x1c0   :  { %2119 = vadd.xlane.f32.xlu1 %v2118_v57  ;;  %v4580_v34 = vsel %vm2973_vm7, %v2480_v17, %v2972_v53  ;;  %v2177_v8 = vpop.xlane.xlu0 %2176  ;;  %v1860_v53 = vmul.f32 %v1382_v54, %v1092_v63  ;;  %v1390_v54 = vrot.slane %v597_v28, %v3402_v44  ;;  %v1921_v57 = vmul.f32 %v1626_v22, %v1153_v3  ;;  %v1101_v63 = vld [vmem:[%s4997_s1 + $0x1f0] sm:$0xff]  ;;  %v1162_v28 = vld [vmem:[%s4997_s1 + $0x3d8] sm:$0xff] }
 0x1c1   :  { %v4583_v31 = vpop.xlane.xlu1 %1987  ;;  %v2772_v55 = vrot.slane %v2177_v8, %v3375_v25  ;;  %v4653_v12 = vrot.slane %v957_v7, %v3382_v30  ;;  %v2124_v8 = vsel %vm45_vm0, %v1870_v49, 0.0  ;;  %v1614_v52 = vrot.slane %v940_v46, %v3402_v44  ;;  %v1157_v46 = vld [vmem:[%s4997_s1 + $0x3b0] sm:$0xff] }
 0x1c2   :  { %v2094_v37 = vsel %vm45_vm0, %v1860_v53, 0.0  ;;  %v1862_v23 = vmul.f32 %v1390_v54, %v1094_v38  ;;  %v1386_v53 = vrot.slane %v595_v32, %v3402_v44  ;;  %v2820_v32 = vrot.slane %v4538_v24, %v3375_v25 }
 0x1c3   :  { %2302 = vadd.xlane.f32.xlu0 %v2301_v20  ;;  %v1020_v20 = vrot.slane %v1004_v40, %v3382_v30  ;;  %v1918_v1 = vmul.f32 %v1614_v52, %v1150_v26  ;;  %v989_v52 = vcombine.high %v4653_v12, %v4653_v12 }
 0x1c4   :  { %2089 = vadd.xlane.f32.xlu1 %v2088_v10  ;;  %v2147_v19 = vpop.xlane.xlu0 %2146  ;;  %v1869_v10 = vmul.f32 %v1418_v18, %v1101_v63  ;;  %v2100_v21 = vsel %vm45_vm0, %v1862_v23, 0.0  ;;  %v1861_v51 = vmul.f32 %v1386_v53, %v1093_v41  ;;  %v1164_v23 = vld [vmem:[%s4997_s1 + $0x3e8] sm:$0xff] }
 0x1c5   :  { %v2180_v4 = vpop.xlane.xlu1 %2179  ;;  %v2732_v9 = vrot.slane %v2147_v19, %v3375_v25  ;;  %v1666_v7 = vrot.slane %v1020_v20, %v3402_v44 }
 0x1c6   :  { %v2776_v42 = vrot.slane %v2180_v4, %v3375_v25  ;;  %v1638_v4 = vrot.slane %v4653_v12, %v3402_v44  ;;  %v2121_v43 = vsel %vm45_vm0, %v1869_v10, 0.0  ;;  %v2097_v49 = vsel %vm45_vm0, %v1861_v51, 0.0 }
 0x1c7   :  { %2086 = vadd.xlane.f32.xlu0 %v2085_v36  ;;  %v3029_v13 = vsel %vm2971_vm6, %v2732_v9, %v3028_v6  ;;  %v1156_v9 = vld [vmem:[%s4997_s1 + $0x3a8] sm:$0xff]  ;;  %v987_v36 = vcombine.high %v4450_v48, %v4450_v48  ;;  %v1163_v48 = vld [vmem:[%s4997_s1 + $0x3e0] sm:$0xff] }
 0x1c8   :  { %v4614_v47 = vsel %vm2961_vm1, %v2776_v42, %v2772_v55  ;;  %2095 = vadd.xlane.f32.xlu1 %v2094_v37  ;;  %v2015_v35 = vpop.xlane.xlu0 %2014  ;;  %v1662_v55 = vrot.slane %v1037_v61, %v3402_v44  ;;  %v1931_v38 = vmul.f32 %v1666_v7, %v1163_v48 }
 0x1c9   :  { %v2150_v15 = vpop.xlane.xlu1 %2149  ;;  %v2556_v17 = vrot.slane %v2015_v35, %v3375_v25  ;;  %v2268_v35 = vsel %vm45_vm0, %v1918_v1, 0.0 }
 0x1ca   :  { %v2736_v14 = vrot.slane %v2150_v15, %v3375_v25 }
 0x1cb   :  { %v2990_v29 = vsel %vm2963_vm2, %v2556_v17, %v4486_v33  ;;  %2092 = vadd.xlane.f32.xlu0 %v2091_v59  ;;  %v2277_v33 = vsel %vm45_vm0, %v1921_v57, 0.0  ;;  %v1642_v17 = vrot.slane %v987_v36, %v3402_v44 }
 0x1cc   :  { %2281 = vadd.xlane.f32.xlu1 %v2280_v0  ;;  %v4642_v56 = vsel %vm2973_vm7, %v2736_v14, %v3029_v13  ;;  %v2021_v6 = vpop.xlane.xlu0 %2020  ;;  %v1924_v13 = vmul.f32 %v1638_v4, %v1156_v9  ;;  %v1930_v14 = vmul.f32 %v1662_v55, %v1162_v28  ;;  %v1036_v0 = vcombine.high %v1020_v20, %v1020_v20 }
 0x1cd   :  { %v4647_v45 = vpop.xlane.xlu1 %2188  ;;  %v2564_v19 = vrot.slane %v2021_v6, %v3375_v25  ;;  %v1925_v61 = vmul.f32 %v1642_v17, %v1157_v46 }
 0x1ce   :  { %v2304_v40 = vsel %vm45_vm0, %v1930_v14, 0.0  ;;  %v2788_v51 = vrot.slane %v4647_v45, %v3375_v25 }
 0x1cf   :  { %2278 = vadd.xlane.f32.xlu0 %v2277_v33  ;;  %v1165_v33 = vld [vmem:[%s4997_s1 + $0x3f0] sm:$0xff]  ;;  %v2289_v20 = vsel %vm45_vm0, %v1925_v61, 0.0 }
 0x1d0   :  { %2125 = vadd.xlane.f32.xlu1 %v2124_v8  ;;  %v2207_v27 = vpop.xlane.xlu0 %2206  ;;  %v1674_v8 = vrot.slane %v1036_v0, %v3402_v44 }
 0x1d1   :  { %v2018_v11 = vpop.xlane.xlu1 %2017  ;;  %v2812_v42 = vrot.slane %v2207_v27, %v3375_v25  ;;  %v1646_v27 = vrot.slane %v989_v52, %v3402_v44 }
 0x1d2   :  { %v2560_v39 = vrot.slane %v2018_v11, %v3375_v25  ;;  %v1933_v12 = vmul.f32 %v1674_v8, %v1165_v33 }
 0x1d3   :  { %v3046_v22 = vsel %vm2963_vm2, %v2812_v42, %v4507_v58  ;;  %2122 = vadd.xlane.f32.xlu0 %v2121_v43  ;;  %v1034_v58 = vrot.slane %v1006_v5, %v3382_v30  ;;  %v2286_v30 = vsel %vm45_vm0, %v1924_v13, 0.0  ;;  %v2307_v5 = vsel %vm45_vm0, %v1931_v38, 0.0 }
 0x1d4   :  { %v2991_v37 = vsel %vm2965_vm3, %v2560_v39, %v2990_v29  ;;  %2101 = vadd.xlane.f32.xlu1 %v2100_v21  ;;  %v4688_v15 = vpop.xlane.xlu0 %1990  ;;  %v1166_v39 = vld [vmem:[%s4997_s1 + $0x3f8] sm:$0xff] }
 0x1d5   :  { %v2992_v2 = vsel %vm2967_vm4, %v2564_v19, %v2991_v37  ;;  %v2024_v62 = vpop.xlane.xlu1 %2023  ;;  %v1670_v29 = vrot.slane %v1034_v58, %v3402_v44  ;;  %v1038_v63 = vcombine.high %v1034_v58, %v1034_v58  ;;  %v1158_v19 = vld [vmem:[%s4997_s1 + $0x3b8] sm:$0xff]  ;;  %s3273_s1 = smov [#allocation2]  }
 0x1d6   :  { %v2568_v3 = vrot.slane %v2024_v62, %v3375_v25  ;;  %v1926_v9 = vmul.f32 %v1646_v27, %v1158_v19  ;;  %s3152_s30 = sshll.u32 %s3273_s1, 4  ;;  %s3153_s30 = int_to_ptr.vmem [resolvable:$true] %s3152_s30 }
 0x1d7   :  { %2098 = vadd.xlane.f32.xlu0 %v2097_v49  ;;  %v1932_v11 = vmul.f32 %v1670_v29, %v1164_v23  ;;  %v1678_v41 = vrot.slane %v1038_v63, %v3402_v44  ;;  %v2313_v44 = vsel %vm45_vm0, %v1933_v12, 0.0  ;;  %s3248_s5 = scalar_lea.vmem %s3153_s30, 128  ;;  %p3253_p1 = scmp.lt.s32.totalorder %s3153_s30, %s3153_s30 }
 0x1d8   :  { %v4698_v59 = vsel %vm2969_vm5, %v2568_v3, %v2992_v2  ;;  %2269 = vadd.xlane.f32.xlu1 %v2268_v35  ;;  %v4705_v57 = vpop.xlane.xlu0 %1996  ;;  %p3249_p0 = scmp.ne.s32.totalorder %s3153_s30, %s3248_s5  ;;  %p3254_p2 = scmp.lt.s32.totalorder %s3248_s5, %s3248_s5 }
 0x1d9   :  { %v2210_v54 = vpop.xlane.xlu1 %2209  ;;  %v2310_v21 = vsel %vm45_vm0, %v1932_v11, 0.0  ;;  %v1934_v1 = vmul.f32 %v1678_v41, %v1166_v39 }
 0x1da   :  { %v2816_v18 = vrot.slane %v2210_v54, %v3375_v25  ;;  %p3255_p3 = por %p3254_p2, %p3253_p1 }
 0x1db   :  { %2287 = vadd.xlane.f32.xlu0 %v2286_v30  ;;  %v2316_v28 = vsel %vm45_vm0, %v1934_v1, 0.0 }
 0x1dc   :  { %v3047_v6 = vsel %vm2965_vm3, %v2816_v18, %v3046_v22  ;;  %2305 = vadd.xlane.f32.xlu1 %v2304_v40  ;;  %v2183_v53 = vpop.xlane.xlu0 %2182  ;;  %v2292_v22 = vsel %vm45_vm0, %v1926_v9, 0.0  ;;  %p3256_p4 = pnand %p3255_p3, %p3249_p0 }
 0x1dd   :  { %v4720_v24 = vpop.xlane.xlu1 %1993  ;;  %v3048_v10 = vsel %vm2967_vm4, %v2820_v32, %v3047_v6  ;;  %v2780_v26 = vrot.slane %v2183_v53, %v3375_v25 }
 0x1df   :  { %v3039_v4 = vsel %vm2963_vm2, %v2780_v26, %v4614_v47  ;;  %2290 = vadd.xlane.f32.xlu0 %v2289_v20 }
 0x1e0   :  { %2308 = vadd.xlane.f32.xlu1 %v2307_v5  ;;  %v4741_v42 = vpop.xlane.xlu0 %2026 }
 0x1e1   :  { %v4736_v55 = vpop.xlane.xlu1 %1999 }
 0x1e3   :  { %2314 = vadd.xlane.f32.xlu0 %v2313_v44  ;;  %v2520_v44 = vrot.slane %v4583_v31, %v3375_v25 }
 0x1e4   :  { %2311 = vadd.xlane.f32.xlu1 %v2310_v21  ;;  %v2057_v43 = vpop.xlane.xlu0 %2056 }
 0x1e5   :  { %v2186_v37 = vpop.xlane.xlu1 %2185  ;;  %v2612_v45 = vrot.slane %v2057_v43, %v3375_v25 }
 0x1e6   :  { %v2784_v47 = vrot.slane %v2186_v37, %v3375_v25  ;;  %v2524_v37 = vrot.slane %v4688_v15, %v3375_v25 }
 0x1e7   :  { %2293 = vadd.xlane.f32.xlu0 %v2292_v22 }
 0x1e8   :  { %v3040_v36 = vsel %vm2965_vm3, %v2784_v47, %v3039_v4  ;;  %2317 = vadd.xlane.f32.xlu1 %v2316_v28  ;;  %v2216_v3 = vpop.xlane.xlu0 %2215  ;;  %v2516_v47 = vrot.slane %v4521_v16, %v3375_v25  ;;  %v2536_v16 = vrot.slane %v4736_v55, %v3375_v25  ;;  %v2572_v55 = vrot.slane %v4741_v42, %v3375_v25 }
 0x1e9   :  { %v4751_v2 = vpop.xlane.xlu1 %2029  ;;  %v3041_v62 = vsel %vm2967_vm4, %v2788_v51, %v3040_v36  ;;  %v2824_v13 = vrot.slane %v2216_v3, %v3375_v25  ;;  %v2528_v51 = vrot.slane %v4720_v24, %v3375_v25  ;;  %v2532_v24 = vrot.slane %v4705_v57, %v3375_v25 }
 0x1ea   :  { %v2982_v36 = vsel %vm2961_vm1, %v2520_v44, %v2516_v47 }
 0x1eb   :  { %v3049_v7 = vsel %vm2969_vm5, %v2824_v13, %v3048_v10  ;;  %v2983_v31 = vsel %vm2963_vm2, %v2524_v37, %v2982_v36 }
 0x1ec   :  { %v2249_v14 = vpop.xlane.xlu0 %2248  ;;  %v2984_v15 = vsel %vm2965_vm3, %v2528_v51, %v2983_v31 }
 0x1ed   :  { %v2060_v35 = vpop.xlane.xlu1 %2059  ;;  %v2868_v17 = vrot.slane %v2249_v14, %v3375_v25 }
 0x1ee   :  { %v2616_v48 = vrot.slane %v2060_v35, %v3375_v25 }
 0x1f0   :  { %v4759_v58 = vsel %vm2961_vm1, %v2616_v48, %v2612_v45  ;;  %v2219_v0 = vpop.xlane.xlu0 %2218  ;;  %v2985_v45 = vsel %vm2967_vm4, %v2532_v24, %v2984_v15 }
 0x1f1   :  { %v2252_v49 = vpop.xlane.xlu1 %2251  ;;  %v2828_v46 = vrot.slane %v2219_v0, %v3375_v25  ;;  %v2986_v48 = vsel %vm2969_vm5, %v2536_v16, %v2985_v45  ;;  %v2576_v0 = vrot.slane %v4751_v2, %v3375_v25 }
 0x1f2   :  { %v2872_v54 = vrot.slane %v2252_v49, %v3375_v25 }
 0x1f3   :  { %v3050_v38 = vsel %vm2971_vm6, %v2828_v46, %v3049_v7 }
 0x1f4   :  { %v3059_v18 = vsel %vm2961_vm1, %v2872_v54, %v2868_v17  ;;  %v2003_v32 = vpop.xlane.xlu0 %2002 }
 0x1f5   :  { %v2222_v30 = vpop.xlane.xlu1 %2221  ;;  %v2540_v13 = vrot.slane %v2003_v32, %v3375_v25 }
 0x1f6   :  { %v2832_v40 = vrot.slane %v2222_v30, %v3375_v25 }
 0x1f7   :  { %v2987_v17 = vsel %vm2971_vm6, %v2540_v13, %v2986_v48 }
 0x1f8   :  { %v4768_v29 = vsel %vm2973_vm7, %v2832_v40, %v3050_v38  ;;  %v4770_v6 = vpop.xlane.xlu0 %2032  ;;  %v2994_v38 = vsel %vm2971_vm6, %v2572_v55, %v4698_v59 }
 0x1f9   :  { %v2261_v63 = vpop.xlane.xlu1 %2260  ;;  %v2995_v32 = vsel %vm2973_vm7, %v2576_v0, %v2994_v38 }
 0x1fa   :  { %v2884_v49 = vrot.slane %v2261_v63, %v3375_v25 }
 0x1fc   :  { %v2192_v8 = vpop.xlane.xlu0 %2191 }
 0x1fd   :  { %v2006_v61 = vpop.xlane.xlu1 %2005  ;;  %v2792_v23 = vrot.slane %v2192_v8, %v3375_v25 }
 0x1fe   :  { %v2544_v7 = vrot.slane %v2006_v61, %v3375_v25 }
 0x1ff   :  { %v3042_v52 = vsel %vm2969_vm5, %v2792_v23, %v3041_v62 }
 0x200   :  { %v2225_v10 = vpop.xlane.xlu0 %2224  ;;  %v2988_v54 = vsel %vm2973_vm7, %v2544_v7, %v2987_v17 }
 0x201   :  { %v4774_v33 = vpop.xlane.xlu1 %2035  ;;  %v2836_v26 = vrot.slane %v2225_v10, %v3375_v25 }
 0x204   :  { %v2195_v5 = vpop.xlane.xlu0 %2194 }
 0x205   :  { %v2228_v53 = vpop.xlane.xlu1 %2227  ;;  %v2796_v41 = vrot.slane %v2195_v5, %v3375_v25 }
 0x206   :  { %v2840_v11 = vrot.slane %v2228_v53, %v3375_v25 }
 0x207   :  { %v3043_v27 = vsel %vm2971_vm6, %v2796_v41, %v3042_v52  ;;  %v2584_v41 = vrot.slane %v4774_v33, %v3375_v25 }
 0x208   :  { %v3052_v20 = vsel %vm2961_vm1, %v2840_v11, %v2836_v26  ;;  %v4781_v39 = vpop.xlane.xlu0 %2062 }
 0x209   :  { %v2198_v12 = vpop.xlane.xlu1 %2197  ;;  %v2620_v51 = vrot.slane %v4781_v39, %v3375_v25 }
 0x20a   :  { %v2800_v4 = vrot.slane %v2198_v12, %v3375_v25 }
 0x20b   :  { %v3004_v13 = vsel %vm2963_vm2, %v2620_v51, %v4759_v58 }
 0x20c   :  { %v4785_v19 = vsel %vm2973_vm7, %v2800_v4, %v3043_v27  ;;  %v4787_v1 = vpop.xlane.xlu0 %2068  ;;  %v2580_v27 = vrot.slane %v4770_v6, %v3375_v25 }
 0x20d   :  { %v2237_v21 = vpop.xlane.xlu1 %2236 }
 0x20e   :  { %v2852_v23 = vrot.slane %v2237_v21, %v3375_v25  ;;  %v2996_v44 = vsel %vm2961_vm1, %v2584_v41, %v2580_v27 }
 0x210   :  { %v2255_v43 = vpop.xlane.xlu0 %2254 }
 0x211   :  { %v4791_v9 = vpop.xlane.xlu1 %2065  ;;  %v2876_v28 = vrot.slane %v2255_v43, %v3375_v25 }
 0x212   :  { %v2624_v6 = vrot.slane %v4791_v9, %v3375_v25 }
 0x213   :  { %v3060_v22 = vsel %vm2963_vm2, %v2876_v28, %v3059_v18 }
 0x214   :  { %v2039_v3 = vpop.xlane.xlu0 %2038  ;;  %3096 = vxpose.xlu0.b32.start [1/16] (narrow) %v4580_v34, 8 }
 0x215   :  { %v4802_v62 = vpop.xlane.xlu1 %2071  ;;  %v2588_v12 = vrot.slane %v2039_v3, %v3375_v25 }
 0x216   :  { %v2632_v45 = vrot.slane %v4802_v62, %v3375_v25 }
 0x217   :  { %v2997_v33 = vsel %vm2963_vm2, %v2588_v12, %v2996_v44 }
 0x218   :  { %v2045_v14 = vpop.xlane.xlu0 %2044  ;;  %3097 = vxpose.xlu0.b32.cont [2/16] (narrow) %v4464_v60, 8 }
 0x219   :  { %v2258_v35 = vpop.xlane.xlu1 %2257  ;;  %v2596_v3 = vrot.slane %v2045_v14, %v3375_v25 }
 0x21a   :  { %v2880_v34 = vrot.slane %v2258_v35, %v3375_v25  ;;  %v3005_v35 = vsel %vm2965_vm3, %v2624_v6, %v3004_v13 }
 0x21c   :  { %v3061_v57 = vsel %vm2965_vm3, %v2880_v34, %v3060_v22  ;;  %v2231_v18 = vpop.xlane.xlu0 %2230  ;;  %3098 = vxpose.xlu0.b32.cont [3/16] (narrow) %v2988_v54, 8  ;;  %v2628_v34 = vrot.slane %v4787_v1, %v3375_v25 }
 0x21d   :  { %v2042_v46 = vpop.xlane.xlu1 %2041  ;;  %v3062_v60 = vsel %vm2967_vm4, %v2884_v49, %v3061_v57  ;;  %v2844_v30 = vrot.slane %v2231_v18, %v3375_v25 }
 0x21e   :  { %v2592_v4 = vrot.slane %v2042_v46, %v3375_v25  ;;  %v3006_v0 = vsel %vm2967_vm4, %v2628_v34, %v3005_v35 }
 0x21f   :  { %v3053_v42 = vsel %vm2963_vm2, %v2844_v30, %v3052_v20  ;;  %v3007_v62 = vsel %vm2969_vm5, %v2632_v45, %v3006_v0 }
 0x220   :  { %v2075_v63 = vpop.xlane.xlu0 %2074  ;;  %3099 = vxpose.xlu0.b32.cont [4/16] (narrow) %v2995_v32, 8  ;;  %v2998_v36 = vsel %vm2965_vm3, %v2592_v4, %v2997_v33 }
 0x221   :  { %v2048_v40 = vpop.xlane.xlu1 %2047  ;;  %v2999_v9 = vsel %vm2967_vm4, %v2596_v3, %v2998_v36  ;;  %v2636_v48 = vrot.slane %v2075_v63, %v3375_v25 }
 0x222   :  { %v2600_v22 = vrot.slane %v2048_v40, %v3375_v25 }
 0x223   :  { %v3008_v46 = vsel %vm2971_vm6, %v2636_v48, %v3007_v62 }
 0x224   :  { %v4831_v61 = vpop.xlane.xlu0 %2104  ;;  %v3000_v14 = vsel %vm2969_vm5, %v2600_v22, %v2999_v9 }
 0x225   :  { %v2234_v2 = vpop.xlane.xlu1 %2233  ;;  %v2676_v44 = vrot.slane %v4831_v61, %v3375_v25 }
 0x226   :  { %v2848_v8 = vrot.slane %v2234_v2, %v3375_v25 }
 0x228   :  { %v3054_v52 = vsel %vm2965_vm3, %v2848_v8, %v3053_v42  ;;  %v2264_v59 = vpop.xlane.xlu0 %2263 }
 0x229   :  { %v2078_v10 = vpop.xlane.xlu1 %2077  ;;  %v4837_v53 = vsel %vm2967_vm4, %v2852_v23, %v3054_v52  ;;  %v2888_v26 = vrot.slane %v2264_v59, %v3375_v25 }
 0x22a   :  { %v2640_v58 = vrot.slane %v2078_v10, %v3375_v25 }
 0x22b   :  { %v3063_v5 = vsel %vm2969_vm5, %v2888_v26, %v3062_v60 }
 0x22c   :  { %v2297_v20 = vpop.xlane.xlu0 %2296  ;;  %v3009_v60 = vsel %vm2973_vm7, %v2640_v58, %v3008_v46 }
 0x22d   :  { %v4841_v11 = vpop.xlane.xlu1 %2107  ;;  %v2932_v37 = vrot.slane %v2297_v20, %v3375_v25 }
 0x22e   :  { %v2680_v12 = vrot.slane %v4841_v11, %v3375_v25 }
 0x230   :  { %v2267_v43 = vpop.xlane.xlu0 %2266  ;;  %v3017_v51 = vsel %vm2961_vm1, %v2680_v12, %v2676_v44 }
 0x231   :  { %v2300_v21 = vpop.xlane.xlu1 %2299  ;;  %v2892_v28 = vrot.slane %v2267_v43, %v3375_v25 }
 0x232   :  { %v2936_v47 = vrot.slane %v2300_v21, %v3375_v25 }
 0x233   :  { %v4865_v16 = vsel %vm2971_vm6, %v2892_v28, %v3063_v5 }
 0x234   :  { %v4861_v31 = vsel %vm2961_vm1, %v2936_v47, %v2932_v37  ;;  %v2051_v39 = vpop.xlane.xlu0 %2050 }
 0x235   :  { %v2054_v15 = vpop.xlane.xlu1 %2053  ;;  %v2604_v7 = vrot.slane %v2051_v39, %v3375_v25 }
 0x236   :  { %v2608_v24 = vrot.slane %v2054_v15, %v3375_v25 }
 0x237   :  { %v3001_v55 = vsel %vm2971_vm6, %v2604_v7, %v3000_v14 }
 0x238   :  { %v2081_v57 = vpop.xlane.xlu0 %2080  ;;  %v3002_v17 = vsel %vm2973_vm7, %v2608_v24, %v3001_v55 }
 0x239   :  { %v2084_v49 = vpop.xlane.xlu1 %2083  ;;  %3100 = vxpose.xlu0.b32.cont [5/16] (narrow) %v3002_v17, 8  ;;  %v2644_v5 = vrot.slane %v2081_v57, %v3375_v25 }
 0x23a   :  { %v2648_v41 = vrot.slane %v2084_v49, %v3375_v25 }
 0x23c   :  { %v4887_v1 = vpop.xlane.xlu0 %2239  ;;  %v3010_v37 = vsel %vm2961_vm1, %v2648_v41, %v2644_v5 }
 0x23d   :  { %v4884_v54 = vpop.xlane.xlu1 %2275  ;;  %3101 = vxpose.xlu0.b32.cont [6/16] (narrow) %v3009_v60, 8  ;;  %v2856_v60 = vrot.slane %v4887_v1, %v3375_v25 }
 0x240   :  { %v4892_v30 = vpop.xlane.xlu0 %2272 }
 0x241   :  { %v4890_v18 = vpop.xlane.xlu1 %2245 }
 0x244   :  { %v4896_v42 = vpop.xlane.xlu0 %2242 }
 0x245   :  { %v4894_v38 = vpop.xlane.xlu1 %2284 }
 0x248   :  { %v2111_v40 = vpop.xlane.xlu0 %2110 }
 0x249   :  { %v2114_v32 = vpop.xlane.xlu1 %2113  ;;  %v2684_v4 = vrot.slane %v2111_v40, %v3375_v25 }
 0x24a   :  { %v2688_v33 = vrot.slane %v2114_v32, %v3375_v25  ;;  %v2860_v32 = vrot.slane %v4896_v42, %v3375_v25 }
 0x24b   :  { %v3018_v6 = vsel %vm2963_vm2, %v2684_v4, %v3017_v51 }
 0x24c   :  { %v2117_v2 = vpop.xlane.xlu0 %2116  ;;  %v3019_v15 = vsel %vm2965_vm3, %v2688_v33, %v3018_v6 }
 0x24d   :  { %v2120_v63 = vpop.xlane.xlu1 %2119  ;;  %v2692_v36 = vrot.slane %v2117_v2, %v3375_v25 }
 0x24e   :  { %v2696_v39 = vrot.slane %v2120_v63, %v3375_v25  ;;  %v2900_v63 = vrot.slane %v4892_v30, %v3375_v25 }
 0x24f   :  { %v3020_v9 = vsel %vm2967_vm4, %v2692_v36, %v3019_v15 }
 0x250   :  { %v4898_v23 = vpop.xlane.xlu0 %2302  ;;  %v3021_v48 = vsel %vm2969_vm5, %v2696_v39, %v3020_v9 }
 0x251   :  { %v2090_v8 = vpop.xlane.xlu1 %2089 }
 0x252   :  { %v2656_v28 = vrot.slane %v2090_v8, %v3375_v25 }
 0x254   :  { %v2087_v10 = vpop.xlane.xlu0 %2086 }
 0x255   :  { %v2096_v52 = vpop.xlane.xlu1 %2095  ;;  %v2652_v20 = vrot.slane %v2087_v10, %v3375_v25 }
 0x256   :  { %v2664_v24 = vrot.slane %v2096_v52, %v3375_v25 }
 0x257   :  { %v3011_v43 = vsel %vm2963_vm2, %v2652_v20, %v3010_v37  ;;  %v2916_v20 = vrot.slane %v4894_v38, %v3375_v25 }
 0x258   :  { %v2093_v26 = vpop.xlane.xlu0 %2092  ;;  %v3012_v22 = vsel %vm2965_vm3, %v2656_v28, %v3011_v43 }
 0x259   :  { %v4900_v59 = vpop.xlane.xlu1 %2281  ;;  %v2660_v47 = vrot.slane %v2093_v26, %v3375_v25 }
 0x25a   :  { %v2912_v10 = vrot.slane %v4900_v59, %v3375_v25 }
 0x25b   :  { %v3013_v61 = vsel %vm2967_vm4, %v2660_v47, %v3012_v22 }
 0x25c   :  { %v2279_v27 = vpop.xlane.xlu0 %2278  ;;  %v3014_v14 = vsel %vm2969_vm5, %v2664_v24, %v3013_v61 }
 0x25d   :  { %v2126_v21 = vpop.xlane.xlu1 %2125  ;;  %v2908_v2 = vrot.slane %v2279_v27, %v3375_v25 }
 0x25e   :  { %v2704_v58 = vrot.slane %v2126_v21, %v3375_v25 }
 0x260   :  { %v2123_v11 = vpop.xlane.xlu0 %2122 }
 0x261   :  { %v2102_v3 = vpop.xlane.xlu1 %2101  ;;  %v2700_v7 = vrot.slane %v2123_v11, %v3375_v25 }
 0x262   :  { %v2672_v45 = vrot.slane %v2102_v3, %v3375_v25 }
 0x263   :  { %v3022_v55 = vsel %vm2971_vm6, %v2700_v7, %v3021_v48 }
 0x264   :  { %v2099_v13 = vpop.xlane.xlu0 %2098  ;;  %v3023_v57 = vsel %vm2973_vm7, %v2704_v58, %v3022_v55 }
 0x265   :  { %v2668_v35 = vrot.slane %v2099_v13, %v3375_v25  ;;  %v2270_v17 = vpop.xlane.xlu1 %2269 }
 0x267   :  { %v3015_v34 = vsel %vm2971_vm6, %v2668_v35, %v3014_v14 }
 0x268   :  { %v3016_v49 = vsel %vm2973_vm7, %v2672_v45, %v3015_v34  ;;  %v2288_v0 = vpop.xlane.xlu0 %2287 }
 0x269   :  { %3102 = vxpose.xlu0.b32.cont [7/16] (narrow) %v3016_v49, 8  ;;  %v2306_v62 = vpop.xlane.xlu1 %2305  ;;  %v2920_v41 = vrot.slane %v2288_v0, %v3375_v25 }
 0x26c   :  { %v2291_v46 = vpop.xlane.xlu0 %2290 }
 0x26d   :  { %3103 = vxpose.xlu0.b32.cont [8/16] (narrow) %v3023_v57, 8  ;;  %v2309_v40 = vpop.xlane.xlu1 %2308  ;;  %v2924_v59 = vrot.slane %v2291_v46, %v3375_v25 }
 0x26e   :  { %v2948_v12 = vrot.slane %v2309_v40, %v3375_v25 }
 0x270   :  { %v2315_v8 = vpop.xlane.xlu0 %2314 }
 0x271   :  { %3104 = vxpose.xlu0.b32.cont [9/16] (narrow) %v4642_v56, 8  ;;  %v3056_v56 = vsel %vm2969_vm5, %v2856_v60, %v4837_v53  ;;  %v2312_v52 = vpop.xlane.xlu1 %2311  ;;  %v2896_v53 = vrot.slane %v2270_v17, %v3375_v25  ;;  %v2956_v51 = vrot.slane %v2315_v8, %v3375_v25 }
 0x272   :  { %v3057_v1 = vsel %vm2971_vm6, %v2860_v32, %v3056_v56  ;;  %v2952_v27 = vrot.slane %v2312_v52, %v3375_v25 }
 0x275   :  { %3105 = vxpose.xlu0.b32.cont [10/16] (narrow) %v4536_v50, 8  ;;  %v2904_v50 = vrot.slane %v4884_v54, %v3375_v25  ;;  %v2294_v54 = vpop.xlane.xlu0 %2293  ;;  %v2318_v37 = vpop.xlane.xlu1 %2317 }
 0x276   :  { %v2928_v4 = vrot.slane %v2294_v54, %v3375_v25 }
 0x277   :  { %v3066_v42 = vsel %vm2961_vm1, %v2904_v50, %v2900_v63 }
 0x278   :  { %v3067_v30 = vsel %vm2963_vm2, %v2908_v2, %v3066_v42 }
 0x279   :  { %3106 = vxpose.xlu0.b32.cont [11/16] (narrow) %v4785_v19, 8  ;;  %v2864_v19 = vrot.slane %v4890_v18, %v3375_v25  ;;  %v3068_v5 = vsel %vm2965_vm3, %v2912_v10, %v3067_v30  ;;  %v2944_v18 = vrot.slane %v2306_v62, %v3375_v25 }
 0x27a   :  { %v3069_v44 = vsel %vm2967_vm4, %v2916_v20, %v3068_v5 }
 0x27b   :  { %v3058_v26 = vsel %vm2973_vm7, %v2864_v19, %v3057_v1  ;;  %v3070_v38 = vsel %vm2969_vm5, %v2920_v41, %v3069_v44 }
 0x27c   :  { %v3071_v33 = vsel %vm2971_vm6, %v2924_v59, %v3070_v38 }
 0x27d   :  { %3107 = vxpose.xlu0.b32.cont [12/16] (narrow) %v4768_v29, 8  ;;  %v2940_v29 = vrot.slane %v4898_v23, %v3375_v25  ;;  %v3065_v23 = vsel %vm2973_vm7, %v2896_v53, %v4865_v16  ;;  %v2960_v16 = vrot.slane %v2318_v37, %v3375_v25 }
 0x27f   :  { %v3074_v21 = vsel %vm2963_vm2, %v2940_v29, %v4861_v31  ;;  %v3072_v31 = vsel %vm2973_vm7, %v2928_v4, %v3071_v33 }
 0x280   :  { %v3075_v43 = vsel %vm2965_vm3, %v2944_v18, %v3074_v21 }
 0x281   :  { %3108 = vxpose.xlu0.b32.cont [13/16] (narrow) %v3058_v26, 8  ;;  %v3076_v47 = vsel %vm2967_vm4, %v2948_v12, %v3075_v43 }
 0x282   :  { %v3077_v28 = vsel %vm2969_vm5, %v2952_v27, %v3076_v47 }
 0x283   :  { %v3078_v11 = vsel %vm2971_vm6, %v2956_v51, %v3077_v28 }
 0x284   :  { %v3079_v6 = vsel %vm2973_vm7, %v2960_v16, %v3078_v11 }
 0x285   :  { %3109 = vxpose.xlu0.b32.cont [14/16] (narrow) %v3065_v23, 8 }
 0x289   :  { %3110 = vxpose.xlu0.b32.cont [15/16] (narrow) %v3072_v31, 8 }
 0x28d   :  { %3111 = vxpose.xlu0.b32.end [16/16] (narrow) %v3079_v6, 8 }
 0x2d1   :  { %v3112_v36 = vpop.trf.xlu0 }
 0x2d2   :  { %v3128_v22 = vrot.slane %v3112_v36, 4 }
 0x2d4   :  { %v3129_v61 = vmax.f32 %v3112_v36, %v3128_v22 }
 0x2d6   :  { %v3130_v3 = vrot.slane %v3129_v61, 2 }
 0x2d8   :  { %v3131_v15 = vmax.f32 %v3129_v61, %v3130_v3 }
 0x2da   :  { %v3132_v39 = vrot.slane %v3131_v15, 1 }
 0x2dc   :  { %v3133_v24 = vmax.f32 %v3131_v15, %v3132_v39 }
 0x2de   :  { %v3134_v13 = vsub.f32 %v3112_v36, %v3133_v24 }
 0x2e0   :  { %v3135_v9 = vmul.f32 1.442695, %v3134_v13 }
 0x2e2   :  { %3243 = vpow2.f32 %v3135_v9 }
 0x2ec   :  { %v3244_v7 = vpop.eup %3243 }
 0x2ed   :  { %v3137_v25 = vrot.slane %v3244_v7, 4 }
 0x2ef   :  { %v3138_v35 = vadd.f32 %v3244_v7, %v3137_v25 }
 0x2f1   :  { %v3139_v45 = vrot.slane %v3138_v35, 2 }
 0x2f3   :  { %v3140_v14 = vadd.f32 %v3139_v45, %v3138_v35 }
 0x2f5   :  { %v3141_v34 = vrot.slane %v3140_v14, 1 }
 0x2f7   :  { %v3142_v48 = vadd.f32 %v3141_v34, %v3140_v14 }
 0x2f9   :  { %3245 = vrcp.f32 %v3142_v48 }
 0x303   :  { %v3246_v49 = vpop.eup %3245 }
 0x304   :  { %v3144_v55 = vmul.f32 %v3246_v49, %v3244_v7 }
 0x306   :  { %3145 = vst [vmem:[#allocation2] sm:$0xff] %v3144_v55 }
 0x307   :  { %3259 = shalt.err (!%p3256_p4)
}
 0x308   :  { %s3260_s8 = scalar_lea.hbm %s5000_s4, 128 }
 0x309   :  { %p3261_p5 = scmp.ne.s32.totalorder %s5000_s4, %s3260_s8  ;;  %p3264_p6 = scmp.lt.u32.totalorder %s3260_s8, %s5000_s4 }
 0x30b   :  { %p3266_p7 = pnand %p3264_p6, %p3261_p5 }
 0x30d   :  { %3269 = shalt.err (!%p3266_p7)
}
 0x30e   :  { %3155 = dma.vmem_to_hbm [thread:$0]  %s3153_s30, 128, %s5000_s4, [#allocation3]  }
 0x30f   :  { %3270 = dma.done.wait [#allocation3], 128  }
 0x310   :  { %3271 = vsyncadd [#allocation3], 4294967168 }
 0x311   :  { %3159 = vsyncpa [#allocation3], 1 }

</bundles_post_ra>
